<compile_context>
chip_gen: v7x
topology: tpu7x:2x2x1
jax: 0.10.0
libtpu: 0.0.40
codegen_flags: <defaults>
</compile_context>

<pallas_src>
import math

import jax
import jax.numpy as jnp
from jax.experimental import pallas as pl
from jax.experimental.pallas import tpu as pltpu

# ----------------------------- model config ---------------------------------
D_MODEL = 32
N_HEADS = 4
D_HEAD = D_MODEL // N_HEADS
D_FF = 64
SRC_VOCAB = 11
TGT_VOCAB = 13
SRC_PAD_IDX = 0
TGT_PAD_IDX = 0
NEG_INF = -1e9            # masked_fill value (avoids NaN for fully-masked rows)
LOGITS_PAD = 128          # lane-dense vocab projection width (sliced to 13 outside)
PROBS_PAD = 128           # lane-dense cross-attn prob output width
ENC_OUT_PAD = 128         # lane-dense encoder output width
SCALE = 1.0 / math.sqrt(D_HEAD)


# ----------------------- packed-slab layout (lane offsets) -------------------
def _lane_offsets(widths):
    offs, o = {}, 0
    for name, w in widths:
        offs[name] = (o, o + w)
        o += w
    return offs, o


ENC_W_WIDTHS = [("wqkv", 3 * D_MODEL), ("wo", D_MODEL), ("w1", D_FF)]
ENC_B_WIDTHS = [("bqkv", 3 * D_MODEL), ("bo", D_MODEL), ("b1", D_FF), ("b2", D_MODEL),
                ("g1", D_MODEL), ("be1", D_MODEL), ("g2", D_MODEL), ("be2", D_MODEL)]
DEC_W_WIDTHS = [("sa_wqkv", 3 * D_MODEL), ("sa_wo", D_MODEL), ("ca_wq", D_MODEL),
                ("ca_wkv", 2 * D_MODEL), ("ca_wo", D_MODEL), ("w1", D_FF),
                ("out_w", LOGITS_PAD)]
DEC_B_WIDTHS = [("sa_bqkv", 3 * D_MODEL), ("sa_bo", D_MODEL), ("ca_bq", D_MODEL),
                ("ca_bkv", 2 * D_MODEL), ("ca_bo", D_MODEL), ("b1", D_FF),
                ("b2", D_MODEL), ("out_b", LOGITS_PAD),
                ("g1", D_MODEL), ("be1", D_MODEL), ("g2", D_MODEL), ("be2", D_MODEL),
                ("g3", D_MODEL), ("be3", D_MODEL)]

ENC_W_OFF, ENC_W_TOTAL = _lane_offsets(ENC_W_WIDTHS)
ENC_B_OFF, ENC_B_TOTAL = _lane_offsets(ENC_B_WIDTHS)
DEC_W_OFF, DEC_W_TOTAL = _lane_offsets(DEC_W_WIDTHS)
DEC_B_OFF, DEC_B_TOTAL = _lane_offsets(DEC_B_WIDTHS)


def _slab(ref, offs, name):
    """Static lane-slice view of a packed parameter slab (zero-cost slice)."""
    lo, hi = offs[name]
    return ref[:, lo:hi]


# ------------------------- in-kernel helper math -----------------------------
def _layernorm(x, g, b):
    mu = jnp.mean(x, axis=-1, keepdims=True)
    var = jnp.mean((x - mu) ** 2, axis=-1, keepdims=True)
    return (x - mu) * jax.lax.rsqrt(var + 1e-5) * g + b


def _mha(q_all, k_all, v_all, bias, *, exact):
    """Head-batched multi-head attention (single QK^T and PV dot_general pair).

    q_all: (Lq, H*Dh)   k_all/v_all: (Lk, H*Dh)   bias: (1|Lq, Lk) additive.
    Returns (Lq, H*Dh) output and the (H, Lq, Lk) prob tensor.
    exact=True uses an exact softmax division (for exported probabilities);
    exact=False uses the approximate EUP reciprocal (internal attentions).
    """
    lq = q_all.shape[0]
    lk = k_all.shape[0]
    q = q_all.reshape(lq, N_HEADS, D_HEAD)
    k = k_all.reshape(lk, N_HEADS, D_HEAD)
    v = v_all.reshape(lk, N_HEADS, D_HEAD)

    s = jnp.einsum("qhd,khd->hqk", q, k,
                   preferred_element_type=jnp.float32) * SCALE
    s = s + bias[None, ...]                       # broadcast over heads
    s = s - jnp.max(s, axis=-1, keepdims=True)
    e = jnp.exp(s)
    denom = jnp.sum(e, axis=-1, keepdims=True)
    if exact:
        p = e / denom
    else:
        p = e * pl.reciprocal(denom, approx=True)
    o = jnp.einsum("hqk,khd->qhd", p, v, preferred_element_type=jnp.float32)
    return o.reshape(lq, N_HEADS * D_HEAD), p


# ----------------------------- Pallas kernels -------------------------------
def _encoder_kernel(x_ref, mask_ref, w_ref, w2_ref, b_ref, o_ref):
    """Full encoder layer for one batch element:
    QKV -> MHA -> out proj -> add&norm -> FFN -> add&norm -> lane-padded out."""
    x = x_ref[0]                                   # (Ls, D)
    valid = mask_ref[0]                            # (1, Ls)
    bias = jnp.where(valid > 0.5, 0.0, NEG_INF)    # (1, Ls) additive key mask

    def w(name): return _slab(w_ref, ENC_W_OFF, name)
    def p(name): return _slab(b_ref, ENC_B_OFF, name)

    qkv = jnp.dot(x, w("wqkv"), preferred_element_type=jnp.float32) + p("bqkv")
    attn, _ = _mha(qkv[:, :D_MODEL],
                   qkv[:, D_MODEL:2 * D_MODEL],
                   qkv[:, 2 * D_MODEL:], bias, exact=False)
    attn = jnp.dot(attn, w("wo"), preferred_element_type=jnp.float32) + p("bo")
    x = _layernorm(x + attn, p("g1"), p("be1"))

    h = jnp.maximum(
        jnp.dot(x, w("w1"), preferred_element_type=jnp.float32) + p("b1"), 0.0)
    f = jnp.dot(h, w2_ref[...], preferred_element_type=jnp.float32) + p("b2")
    x = _layernorm(x + f, p("g2"), p("be2"))

    # lane-dense (128-wide) output -> unmasked vst; wrapper slices [:, :D].
    pad = jnp.zeros((x.shape[0], ENC_OUT_PAD - D_MODEL), jnp.float32)
    o_ref[0] = jnp.concatenate([x, pad], axis=-1)


def _decoder_kernel(y_ref, enc_ref, tmask_ref, smask_ref,
                    w_ref, w2_ref, b_ref, logits_ref, probs_ref):
    """Full decoder layer for one batch element: masked self-attn ->
    cross-attn -> FFN (each with add&norm) -> lane-padded vocab projection."""
    y = y_ref[0]                                   # (Lt, D)
    enc = enc_ref[0, :, 0:D_MODEL]                 # (Ls, D) low lanes of padded enc
    tvalid = tmask_ref[0]                          # (1, Lt)
    svalid = smask_ref[0]                          # (1, Ls)
    lt = y.shape[0]
    ls = enc.shape[0]

    # causal + target-pad mask built in-kernel (no HBM mask tensor).
    rows = jax.lax.broadcasted_iota(jnp.int32, (lt, lt), 0)
    cols = jax.lax.broadcasted_iota(jnp.int32, (lt, lt), 1)
    self_mask = (rows >= cols) & (tvalid > 0.5)          # (Lt, Lt)
    self_bias = jnp.where(self_mask, 0.0, NEG_INF)       # (Lt, Lt)
    cross_bias = jnp.where(svalid > 0.5, 0.0, NEG_INF)   # (1, Ls)

    def w(name): return _slab(w_ref, DEC_W_OFF, name)
    def p(name): return _slab(b_ref, DEC_B_OFF, name)

    # ---- masked self-attention ----
    qkv = jnp.dot(y, w("sa_wqkv"), preferred_element_type=jnp.float32) + p("sa_bqkv")
    attn, _ = _mha(qkv[:, :D_MODEL],
                   qkv[:, D_MODEL:2 * D_MODEL],
                   qkv[:, 2 * D_MODEL:], self_bias, exact=False)
    attn = jnp.dot(attn, w("sa_wo"), preferred_element_type=jnp.float32) + p("sa_bo")
    x = _layernorm(y + attn, p("g1"), p("be1"))

    # ---- cross attention (Q from decoder stream, K/V from encoder output) ----
    q_all = jnp.dot(x, w("ca_wq"), preferred_element_type=jnp.float32) + p("ca_bq")
    kv = jnp.dot(enc, w("ca_wkv"), preferred_element_type=jnp.float32) + p("ca_bkv")
    cattn, cprobs = _mha(q_all, kv[:, :D_MODEL], kv[:, D_MODEL:],
                         cross_bias, exact=True)          # exported -> exact softmax
    cattn = jnp.dot(cattn, w("ca_wo"), preferred_element_type=jnp.float32) + p("ca_bo")
    x = _layernorm(x + cattn, p("g2"), p("be2"))

    # ---- feed-forward ----
    h = jnp.maximum(
        jnp.dot(x, w("w1"), preferred_element_type=jnp.float32) + p("b1"), 0.0)
    f = jnp.dot(h, w2_ref[...], preferred_element_type=jnp.float32) + p("b2")
    x = _layernorm(x + f, p("g3"), p("be3"))

    # ---- lane-dense (128-wide) vocab projection ----
    logits_ref[0] = (
        jnp.dot(x, w("out_w"), preferred_element_type=jnp.float32) + p("out_b"))

    # ---- cross-attn probs, heads stacked along lanes, padded to 128 ----
    pr = jnp.transpose(cprobs, (1, 0, 2)).reshape(lt, N_HEADS * ls)
    pad = jnp.zeros((lt, PROBS_PAD - N_HEADS * ls), jnp.float32)
    probs_ref[0] = jnp.concatenate([pr, pad], axis=-1)


# ----------------------------- pallas_call wrappers --------------------------
def encoder_pallas(enc_p, x, src_valid):
    B, Ls, D = x.shape
    return pl.pallas_call(
        _encoder_kernel,
        out_shape=jax.ShapeDtypeStruct((B, Ls, ENC_OUT_PAD), jnp.float32),
        grid=(B,),
        in_specs=[
            pl.BlockSpec((1, Ls, D), lambda b: (b, 0, 0)),
            pl.BlockSpec((1, 1, Ls), lambda b: (b, 0, 0)),
            pl.BlockSpec((D_MODEL, ENC_W_TOTAL), lambda b: (0, 0)),   # weight slab
            pl.BlockSpec((D_FF, D_MODEL), lambda b: (0, 0)),          # w2
            pl.BlockSpec((1, ENC_B_TOTAL), lambda b: (0, 0)),         # bias/LN slab
        ],
        out_specs=pl.BlockSpec((1, Ls, ENC_OUT_PAD), lambda b: (b, 0, 0)),
        compiler_params=pltpu.CompilerParams(dimension_semantics=("parallel",)),
    )(x, src_valid, enc_p["w"], enc_p["w2"], enc_p["b"])


def decoder_pallas(dec_p, y, enc_out_pad, tgt_valid, src_valid):
    B, Lt, D = y.shape
    Ls = enc_out_pad.shape[1]
    return pl.pallas_call(
        _decoder_kernel,
        out_shape=(
            jax.ShapeDtypeStruct((B, Lt, LOGITS_PAD), jnp.float32),
            jax.ShapeDtypeStruct((B, Lt, PROBS_PAD), jnp.float32),
        ),
        grid=(B,),
        in_specs=[
            pl.BlockSpec((1, Lt, D), lambda b: (b, 0, 0)),
            pl.BlockSpec((1, Ls, ENC_OUT_PAD), lambda b: (b, 0, 0)),
            pl.BlockSpec((1, 1, Lt), lambda b: (b, 0, 0)),
            pl.BlockSpec((1, 1, Ls), lambda b: (b, 0, 0)),
            pl.BlockSpec((D_MODEL, DEC_W_TOTAL), lambda b: (0, 0)),   # weight slab
            pl.BlockSpec((D_FF, D_MODEL), lambda b: (0, 0)),          # w2
            pl.BlockSpec((1, DEC_B_TOTAL), lambda b: (0, 0)),         # bias/LN slab
        ],
        out_specs=(
            pl.BlockSpec((1, Lt, LOGITS_PAD), lambda b: (b, 0, 0)),
            pl.BlockSpec((1, Lt, PROBS_PAD), lambda b: (b, 0, 0)),
        ),
        compiler_params=pltpu.CompilerParams(dimension_semantics=("parallel",)),
    )(y, enc_out_pad, tgt_valid, src_valid, dec_p["w"], dec_p["w2"], dec_p["b"])


# ----------------------------- model (glue) ----------------------------------
def _pack_slab(widths, arrays):
    parts = []
    for name, wdt in widths:
        a = arrays[name]
        assert a.shape[-1] == wdt, (name, a.shape, wdt)
        parts.append(a)
    return jnp.concatenate(parts, axis=-1)


def init_params(key):
    def dense(k, din, dout):
        scale = 1.0 / math.sqrt(din)
        w = jax.random.uniform(k, (din, dout), jnp.float32, -scale, scale)
        return w, jnp.zeros((dout,), jnp.float32)

    keys = jax.random.split(key, 16)
    p = {}
    p["src_emb"] = 0.02 * jax.random.normal(keys[0], (SRC_VOCAB, D_MODEL))
    p["tgt_emb"] = 0.02 * jax.random.normal(keys[1], (TGT_VOCAB, D_MODEL))

    ones = jnp.ones((D_MODEL,), jnp.float32)
    zeros = jnp.zeros((D_MODEL,), jnp.float32)

    def qkv_pack(kbase):
        ks = jax.random.split(kbase, 4)
        wq, bq = dense(ks[0], D_MODEL, D_MODEL)
        wk, bk = dense(ks[1], D_MODEL, D_MODEL)
        wv, bv = dense(ks[2], D_MODEL, D_MODEL)
        wo, bo = dense(ks[3], D_MODEL, D_MODEL)
        return (jnp.concatenate([wq, wk, wv], axis=1),      # (D, 3D)
                jnp.concatenate([bq, bk, bv]),               # (3D,)
                wo, bo, (wq, bq, wk, bk, wv, bv))

    # ---- encoder layer ----
    e_wqkv, e_bqkv, e_wo, e_bo, _ = qkv_pack(keys[2])
    ks = jax.random.split(keys[3], 2)
    e_w1, e_b1 = dense(ks[0], D_MODEL, D_FF)
    e_w2, e_b2 = dense(ks[1], D_FF, D_MODEL)
    p["enc"] = {
        "w": _pack_slab(ENC_W_WIDTHS, {"wqkv": e_wqkv, "wo": e_wo, "w1": e_w1}),
        "w2": e_w2,
        "b": _pack_slab(ENC_B_WIDTHS, {
            "bqkv": e_bqkv, "bo": e_bo, "b1": e_b1, "b2": e_b2,
            "g1": ones, "be1": zeros, "g2": ones, "be2": zeros})[None, :],
    }

    # ---- decoder layer ----
    d_wqkv, d_bqkv, d_wo, d_bo, _ = qkv_pack(keys[4])
    _, _, c_wo, c_bo, (cwq, cbq, cwk, cbk, cwv, cbv) = qkv_pack(keys[5])
    ks = jax.random.split(keys[6], 2)
    d_w1, d_b1 = dense(ks[0], D_MODEL, D_FF)
    d_w2, d_b2 = dense(ks[1], D_FF, D_MODEL)
    out_w, out_b = dense(keys[7], D_MODEL, TGT_VOCAB)
    out_w_pad = jnp.zeros((D_MODEL, LOGITS_PAD), jnp.float32).at[:, :TGT_VOCAB].set(out_w)
    out_b_pad = jnp.zeros((LOGITS_PAD,), jnp.float32).at[:TGT_VOCAB].set(out_b)
    p["dec"] = {
        "w": _pack_slab(DEC_W_WIDTHS, {
            "sa_wqkv": d_wqkv, "sa_wo": d_wo, "ca_wq": cwq,
            "ca_wkv": jnp.concatenate([cwk, cwv], axis=1), "ca_wo": c_wo,
            "w1": d_w1, "out_w": out_w_pad}),
        "w2": d_w2,
        "b": _pack_slab(DEC_B_WIDTHS, {
            "sa_bqkv": d_bqkv, "sa_bo": d_bo, "ca_bq": cbq,
            "ca_bkv": jnp.concatenate([cbk, cbv]), "ca_bo": c_bo,
            "b1": d_b1, "b2": d_b2, "out_b": out_b_pad,
            "g1": ones, "be1": zeros, "g2": ones, "be2": zeros,
            "g3": ones, "be3": zeros})[None, :],
    }
    return p


def positional_encoding(length, d_model):
    pos = jnp.arange(length)[:, None].astype(jnp.float32)
    i = jnp.arange(d_model // 2)[None, :].astype(jnp.float32)
    angle = pos / jnp.power(10000.0, 2.0 * i / d_model)
    pe = jnp.zeros((length, d_model))
    pe = pe.at[:, 0::2].set(jnp.sin(angle))
    pe = pe.at[:, 1::2].set(jnp.cos(angle))
    return pe


def transformer_forward(params, src, target):
    B, Ls = src.shape
    _, Lt = target.shape

    # compact pad masks (built in plain JAX, expanded to biases inside kernels)
    src_valid = (src != SRC_PAD_IDX).astype(jnp.float32)[:, None, :]     # (B,1,Ls)
    tgt_valid = (target != TGT_PAD_IDX).astype(jnp.float32)[:, None, :]  # (B,1,Lt)

    x_src = params["src_emb"][src] + positional_encoding(Ls, D_MODEL)[None]
    x_tgt = params["tgt_emb"][target] + positional_encoding(Lt, D_MODEL)[None]

    enc_out_pad = encoder_pallas(params["enc"], x_src, src_valid)   # (B, Ls, 128)
    logits_pad, probs_pad = decoder_pallas(
        params["dec"], x_tgt, enc_out_pad, tgt_valid, src_valid)

    logits = logits_pad[:, :, :TGT_VOCAB]
    dec_attn_score = (probs_pad[:, :, :N_HEADS * Ls]
                      .reshape(B, Lt, N_HEADS, Ls)
                      .transpose(0, 2, 1, 3))
    return logits, dec_attn_score


# ----------------------------------- main ------------------------------------
if __name__ == "__main__":
    key = jax.random.PRNGKey(0)
    kp, ks, kt = jax.random.split(key, 3)

    params = init_params(kp)

    B, LS, LT = 2, 8, 8
    src = jax.random.randint(ks, (B, LS), 1, SRC_VOCAB, dtype=jnp.int32)
    target = jax.random.randint(kt, (B, LT), 1, TGT_VOCAB, dtype=jnp.int32)
    # introduce some padding tokens to exercise the masks
    src = src.at[1, LS - 2:].set(SRC_PAD_IDX)
    target = target.at[1, LT - 3:].set(TGT_PAD_IDX)

    output, dec_attn_score = jax.jit(transformer_forward)(params, src, target)
    jax.block_until_ready((output, dec_attn_score))

    assert output.shape == (B, LT, TGT_VOCAB)
    assert dec_attn_score.shape == (B, N_HEADS, LT, LS)
    assert bool(jnp.all(jnp.isfinite(output)))
    assert bool(jnp.all(jnp.isfinite(dec_attn_score)))
    # cross-attention rows are proper probability distributions (exact softmax)
    assert bool(jnp.allclose(dec_attn_score.sum(-1), 1.0, atol=1e-4))
    print("KERNEL_OK")
</pallas_src>

<mosaic_0001>
module attributes {stable_mosaic.version = 11 : i64} {
  func.func @_decoder_kernel(%arg0: i32, %arg1: memref<1x8x32xf32, #tpu.memory_space<vmem>>, %arg2: memref<1x8x128xf32, #tpu.memory_space<vmem>>, %arg3: memref<1x1x8xf32, #tpu.memory_space<vmem>>, %arg4: memref<1x1x8xf32, #tpu.memory_space<vmem>>, %arg5: memref<32x448xf32, #tpu.memory_space<vmem>>, %arg6: memref<64x32xf32, #tpu.memory_space<vmem>>, %arg7: memref<1x672xf32, #tpu.memory_space<vmem>>, %arg8: memref<1x8x128xf32, #tpu.memory_space<vmem>>, %arg9: memref<1x8x128xf32, #tpu.memory_space<vmem>>) attributes {dimension_semantics = [#tpu.dimension_semantics<parallel>], iteration_bounds = array<i64: 2>, scalar_prefetch = 0 : i64, scratch_operands = 0 : i64, tpu.core_type = #tpu.core_type<tc>, window_params = [{transform_indices = @transform_0, window_bounds = array<i64: 1, 8, 32>}, {transform_indices = @transform_1, window_bounds = array<i64: 1, 8, 128>}, {transform_indices = @transform_2, window_bounds = array<i64: 1, 1, 8>}, {transform_indices = @transform_3, window_bounds = array<i64: 1, 1, 8>}, {pipeline_mode = #tpu.pipeline_mode<synchronous>, transform_indices = @transform_4, window_bounds = array<i64: 32, 448>}, {pipeline_mode = #tpu.pipeline_mode<synchronous>, transform_indices = @transform_5, window_bounds = array<i64: 64, 32>}, {pipeline_mode = #tpu.pipeline_mode<synchronous>, transform_indices = @transform_6, window_bounds = array<i64: 1, 672>}, {transform_indices = @transform_7, window_bounds = array<i64: 1, 8, 128>}, {transform_indices = @transform_8, window_bounds = array<i64: 1, 8, 128>}]} {
    %c0 = arith.constant 0 : index
    %c0_0 = arith.constant 0 : index
    %c0_1 = arith.constant 0 : index
    %0 = vector.load %arg1[%c0, %c0_0, %c0_1] : memref<1x8x32xf32, #tpu.memory_space<vmem>>, vector<1x8x32xf32>
    %1 = vector.shape_cast %0 : vector<1x8x32xf32> to vector<8x32xf32>
    %c0_2 = arith.constant 0 : index
    %c0_3 = arith.constant 0 : index
    %c0_4 = arith.constant 0 : index
    %2 = vector.load %arg2[%c0_2, %c0_3, %c0_4] : memref<1x8x128xf32, #tpu.memory_space<vmem>>, vector<1x8x32xf32>
    %3 = vector.shape_cast %2 : vector<1x8x32xf32> to vector<8x32xf32>
    %c0_5 = arith.constant 0 : index
    %c0_6 = arith.constant 0 : index
    %c0_7 = arith.constant 0 : index
    %4 = vector.load %arg3[%c0_5, %c0_6, %c0_7] : memref<1x1x8xf32, #tpu.memory_space<vmem>>, vector<1x1x8xf32>
    %5 = vector.shape_cast %4 : vector<1x1x8xf32> to vector<1x8xf32>
    %c0_8 = arith.constant 0 : index
    %c0_9 = arith.constant 0 : index
    %c0_10 = arith.constant 0 : index
    %6 = vector.load %arg4[%c0_8, %c0_9, %c0_10] : memref<1x1x8xf32, #tpu.memory_space<vmem>>, vector<1x1x8xf32>
    %7 = vector.shape_cast %6 : vector<1x1x8xf32> to vector<1x8xf32>
    %8 = tpu.iota {dimensions = array<i32: 0>} : vector<8x8xi32>
    %9 = tpu.iota {dimensions = array<i32: 1>} : vector<8x8xi32>
    %10 = arith.cmpi sge, %8, %9 : vector<8x8xi32>
    %cst = arith.constant 5.000000e-01 : f32
    %11 = vector.broadcast %cst : f32 to vector<1x8xf32>
    %12 = arith.cmpf ogt, %5, %11 : vector<1x8xf32>
    %13 = vector.broadcast %12 : vector<1x8xi1> to vector<8x8xi1>
    %14 = arith.andi %10, %13 : vector<8x8xi1>
    %cst_11 = arith.constant 0.000000e+00 : f32
    %cst_12 = arith.constant -1.000000e+09 : f32
    %15 = vector.broadcast %cst_11 : f32 to vector<8x8xf32>
    %16 = vector.broadcast %cst_12 : f32 to vector<8x8xf32>
    %17 = arith.select %14, %15, %16 : vector<8x8xi1>, vector<8x8xf32>
    %cst_13 = arith.constant 5.000000e-01 : f32
    %18 = vector.broadcast %cst_13 : f32 to vector<1x8xf32>
    %19 = arith.cmpf ogt, %7, %18 : vector<1x8xf32>
    %cst_14 = arith.constant 0.000000e+00 : f32
    %cst_15 = arith.constant -1.000000e+09 : f32
    %20 = vector.broadcast %cst_14 : f32 to vector<1x8xf32>
    %21 = vector.broadcast %cst_15 : f32 to vector<1x8xf32>
    %22 = arith.select %19, %20, %21 : vector<1x8xi1>, vector<1x8xf32>
    %c0_16 = arith.constant 0 : index
    %c0_17 = arith.constant 0 : index
    %23 = vector.load %arg5[%c0_16, %c0_17] : memref<32x448xf32, #tpu.memory_space<vmem>>, vector<32x96xf32>
    %cst_18 = arith.constant dense<0.000000e+00> : vector<8x96xf32>
    %24 = tpu.matmul %1, %23, %cst_18 {dimension_numbers = #tpu.dot_dimension_numbers<[1], [0], [0], [1], [0, 0, 1, 1], [], []>} : vector<8x32xf32>, vector<32x96xf32>, vector<8x96xf32> -> vector<8x96xf32>
    %c0_19 = arith.constant 0 : index
    %c0_20 = arith.constant 0 : index
    %25 = vector.load %arg7[%c0_19, %c0_20] : memref<1x672xf32, #tpu.memory_space<vmem>>, vector<1x96xf32>
    %26 = vector.broadcast %25 : vector<1x96xf32> to vector<8x96xf32>
    %27 = arith.addf %24, %26 : vector<8x96xf32>
    %28 = vector.extract_strided_slice %27 {offsets = [0, 0], sizes = [8, 32], strides = [1, 1]} : vector<8x96xf32> to vector<8x32xf32>
    %29 = vector.extract_strided_slice %27 {offsets = [0, 32], sizes = [8, 32], strides = [1, 1]} : vector<8x96xf32> to vector<8x32xf32>
    %30 = vector.extract_strided_slice %27 {offsets = [0, 64], sizes = [8, 32], strides = [1, 1]} : vector<8x96xf32> to vector<8x32xf32>
    %31 = vector.shape_cast %28 : vector<8x32xf32> to vector<8x4x8xf32>
    %32 = vector.shape_cast %29 : vector<8x32xf32> to vector<8x4x8xf32>
    %33 = vector.shape_cast %30 : vector<8x32xf32> to vector<8x4x8xf32>
    "tpu.trace_start"() <{level = 10 : i32, message = "qhd,khd->hqk"}> : () -> ()
    %cst_21 = arith.constant dense<0.000000e+00> : vector<4x8x8xf32>
    %34 = tpu.matmul %31, %32, %cst_21 {dimension_numbers = #tpu.dot_dimension_numbers<[2], [2], [0], [0], [0, 1, 0, 0, 1, 0], [1], [1]>} : vector<8x4x8xf32>, vector<8x4x8xf32>, vector<4x8x8xf32> -> vector<4x8x8xf32>
    "tpu.trace_stop"() : () -> ()
    %cst_22 = arith.constant 0.353553385 : f32
    %35 = vector.broadcast %cst_22 : f32 to vector<4x8x8xf32>
    %36 = arith.mulf %34, %35 : vector<4x8x8xf32>
    %37 = vector.shape_cast %17 : vector<8x8xf32> to vector<1x8x8xf32>
    %38 = vector.broadcast %37 : vector<1x8x8xf32> to vector<4x8x8xf32>
    %39 = arith.addf %36, %38 : vector<4x8x8xf32>
    %cst_23 = arith.constant dense<0xFF800000> : vector<4x8xf32>
    %40 = vector.multi_reduction <maximumf>, %39, %cst_23 [2] : vector<4x8x8xf32> to vector<4x8xf32>
    %41 = vector.shape_cast %40 : vector<4x8xf32> to vector<4x8x1xf32>
    %42 = vector.broadcast %41 : vector<4x8x1xf32> to vector<4x8x8xf32>
    %43 = arith.subf %39, %42 : vector<4x8x8xf32>
    %44 = math.exp %43 : vector<4x8x8xf32>
    %cst_24 = arith.constant dense<0.000000e+00> : vector<4x8xf32>
    %45 = vector.multi_reduction <add>, %44, %cst_24 [2] : vector<4x8x8xf32> to vector<4x8xf32>
    %46 = vector.shape_cast %45 : vector<4x8xf32> to vector<4x8x1xf32>
    %47 = tpu.reciprocal %46 {approx = true} : vector<4x8x1xf32> -> vector<4x8x1xf32>
    %48 = vector.broadcast %47 : vector<4x8x1xf32> to vector<4x8x8xf32>
    %49 = arith.mulf %44, %48 : vector<4x8x8xf32>
    "tpu.trace_start"() <{level = 10 : i32, message = "hqk,khd->qhd"}> : () -> ()
    %cst_25 = arith.constant dense<0.000000e+00> : vector<4x8x8xf32>
    %50 = tpu.matmul %33, %49, %cst_25 {dimension_numbers = #tpu.dot_dimension_numbers<[0], [2], [2], [1], [0, 1, 0, 2, 1, 1], [1], [0]>} : vector<8x4x8xf32>, vector<4x8x8xf32>, vector<4x8x8xf32> -> vector<4x8x8xf32>
    %51 = tpu.transpose %50, [2, 0, 1] : vector<4x8x8xf32> -> vector<8x4x8xf32>
    "tpu.trace_stop"() : () -> ()
    %52 = vector.shape_cast %51 : vector<8x4x8xf32> to vector<8x32xf32>
    %c0_26 = arith.constant 0 : index
    %c96 = arith.constant 96 : index
    %53 = vector.load %arg5[%c0_26, %c96] : memref<32x448xf32, #tpu.memory_space<vmem>>, vector<32x32xf32>
    %cst_27 = arith.constant dense<0.000000e+00> : vector<8x32xf32>
    %54 = tpu.matmul %52, %53, %cst_27 {dimension_numbers = #tpu.dot_dimension_numbers<[1], [0], [0], [1], [0, 0, 1, 1], [], []>} : vector<8x32xf32>, vector<32x32xf32>, vector<8x32xf32> -> vector<8x32xf32>
    %c0_28 = arith.constant 0 : index
    %c96_29 = arith.constant 96 : index
    %55 = vector.load %arg7[%c0_28, %c96_29] : memref<1x672xf32, #tpu.memory_space<vmem>>, vector<1x32xf32>
    %56 = vector.broadcast %55 : vector<1x32xf32> to vector<8x32xf32>
    %57 = arith.addf %54, %56 : vector<8x32xf32>
    %58 = arith.addf %1, %57 : vector<8x32xf32>
    %c0_30 = arith.constant 0 : index
    %c480 = arith.constant 480 : index
    %59 = vector.load %arg7[%c0_30, %c480] : memref<1x672xf32, #tpu.memory_space<vmem>>, vector<1x32xf32>
    %c0_31 = arith.constant 0 : index
    %c512 = arith.constant 512 : index
    %60 = vector.load %arg7[%c0_31, %c512] : memref<1x672xf32, #tpu.memory_space<vmem>>, vector<1x32xf32>
    %cst_32 = arith.constant dense<0.000000e+00> : vector<8xf32>
    %61 = vector.multi_reduction <add>, %58, %cst_32 [1] : vector<8x32xf32> to vector<8xf32>
    %62 = vector.shape_cast %61 : vector<8xf32> to vector<8x1xf32>
    %cst_33 = arith.constant 3.200000e+01 : f32
    %63 = vector.broadcast %cst_33 : f32 to vector<8x1xf32>
    %64 = arith.divf %62, %63 : vector<8x1xf32>
    %65 = vector.broadcast %64 : vector<8x1xf32> to vector<8x32xf32>
    %66 = arith.subf %58, %65 : vector<8x32xf32>
    %67 = arith.mulf %66, %66 : vector<8x32xf32>
    %cst_34 = arith.constant dense<0.000000e+00> : vector<8xf32>
    %68 = vector.multi_reduction <add>, %67, %cst_34 [1] : vector<8x32xf32> to vector<8xf32>
    %69 = vector.shape_cast %68 : vector<8xf32> to vector<8x1xf32>
    %cst_35 = arith.constant 3.200000e+01 : f32
    %70 = vector.broadcast %cst_35 : f32 to vector<8x1xf32>
    %71 = arith.divf %69, %70 : vector<8x1xf32>
    %72 = vector.broadcast %64 : vector<8x1xf32> to vector<8x32xf32>
    %73 = arith.subf %58, %72 : vector<8x32xf32>
    %cst_36 = arith.constant 9.99999974E-6 : f32
    %74 = vector.broadcast %cst_36 : f32 to vector<8x1xf32>
    %75 = arith.addf %71, %74 : vector<8x1xf32>
    %76 = math.rsqrt %75 : vector<8x1xf32>
    %77 = vector.broadcast %76 : vector<8x1xf32> to vector<8x32xf32>
    %78 = arith.mulf %73, %77 : vector<8x32xf32>
    %79 = vector.broadcast %59 : vector<1x32xf32> to vector<8x32xf32>
    %80 = arith.mulf %78, %79 : vector<8x32xf32>
    %81 = vector.broadcast %60 : vector<1x32xf32> to vector<8x32xf32>
    %82 = arith.addf %80, %81 : vector<8x32xf32>
    %c0_37 = arith.constant 0 : index
    %c128 = arith.constant 128 : index
    %83 = vector.load %arg5[%c0_37, %c128] : memref<32x448xf32, #tpu.memory_space<vmem>>, vector<32x32xf32>
    %cst_38 = arith.constant dense<0.000000e+00> : vector<8x32xf32>
    %84 = tpu.matmul %82, %83, %cst_38 {dimension_numbers = #tpu.dot_dimension_numbers<[1], [0], [0], [1], [0, 0, 1, 1], [], []>} : vector<8x32xf32>, vector<32x32xf32>, vector<8x32xf32> -> vector<8x32xf32>
    %c0_39 = arith.constant 0 : index
    %c128_40 = arith.constant 128 : index
    %85 = vector.load %arg7[%c0_39, %c128_40] : memref<1x672xf32, #tpu.memory_space<vmem>>, vector<1x32xf32>
    %86 = vector.broadcast %85 : vector<1x32xf32> to vector<8x32xf32>
    %87 = arith.addf %84, %86 : vector<8x32xf32>
    %c0_41 = arith.constant 0 : index
    %c160 = arith.constant 160 : index
    %88 = vector.load %arg5[%c0_41, %c160] : memref<32x448xf32, #tpu.memory_space<vmem>>, vector<32x64xf32>
    %cst_42 = arith.constant dense<0.000000e+00> : vector<8x64xf32>
    %89 = tpu.matmul %3, %88, %cst_42 {dimension_numbers = #tpu.dot_dimension_numbers<[1], [0], [0], [1], [0, 0, 1, 1], [], []>} : vector<8x32xf32>, vector<32x64xf32>, vector<8x64xf32> -> vector<8x64xf32>
    %c0_43 = arith.constant 0 : index
    %c160_44 = arith.constant 160 : index
    %90 = vector.load %arg7[%c0_43, %c160_44] : memref<1x672xf32, #tpu.memory_space<vmem>>, vector<1x64xf32>
    %91 = vector.broadcast %90 : vector<1x64xf32> to vector<8x64xf32>
    %92 = arith.addf %89, %91 : vector<8x64xf32>
    %93 = vector.extract_strided_slice %92 {offsets = [0, 0], sizes = [8, 32], strides = [1, 1]} : vector<8x64xf32> to vector<8x32xf32>
    %94 = vector.extract_strided_slice %92 {offsets = [0, 32], sizes = [8, 32], strides = [1, 1]} : vector<8x64xf32> to vector<8x32xf32>
    %95 = vector.shape_cast %87 : vector<8x32xf32> to vector<8x4x8xf32>
    %96 = vector.shape_cast %93 : vector<8x32xf32> to vector<8x4x8xf32>
    %97 = vector.shape_cast %94 : vector<8x32xf32> to vector<8x4x8xf32>
    "tpu.trace_start"() <{level = 10 : i32, message = "qhd,khd->hqk"}> : () -> ()
    %cst_45 = arith.constant dense<0.000000e+00> : vector<4x8x8xf32>
    %98 = tpu.matmul %95, %96, %cst_45 {dimension_numbers = #tpu.dot_dimension_numbers<[2], [2], [0], [0], [0, 1, 0, 0, 1, 0], [1], [1]>} : vector<8x4x8xf32>, vector<8x4x8xf32>, vector<4x8x8xf32> -> vector<4x8x8xf32>
    "tpu.trace_stop"() : () -> ()
    %cst_46 = arith.constant 0.353553385 : f32
    %99 = vector.broadcast %cst_46 : f32 to vector<4x8x8xf32>
    %100 = arith.mulf %98, %99 : vector<4x8x8xf32>
    %101 = vector.shape_cast %22 : vector<1x8xf32> to vector<1x1x8xf32>
    %102 = vector.broadcast %101 : vector<1x1x8xf32> to vector<4x8x8xf32>
    %103 = arith.addf %100, %102 : vector<4x8x8xf32>
    %cst_47 = arith.constant dense<0xFF800000> : vector<4x8xf32>
    %104 = vector.multi_reduction <maximumf>, %103, %cst_47 [2] : vector<4x8x8xf32> to vector<4x8xf32>
    %105 = vector.shape_cast %104 : vector<4x8xf32> to vector<4x8x1xf32>
    %106 = vector.broadcast %105 : vector<4x8x1xf32> to vector<4x8x8xf32>
    %107 = arith.subf %103, %106 : vector<4x8x8xf32>
    %108 = math.exp %107 : vector<4x8x8xf32>
    %cst_48 = arith.constant dense<0.000000e+00> : vector<4x8xf32>
    %109 = vector.multi_reduction <add>, %108, %cst_48 [2] : vector<4x8x8xf32> to vector<4x8xf32>
    %110 = vector.shape_cast %109 : vector<4x8xf32> to vector<4x8x1xf32>
    %111 = vector.broadcast %110 : vector<4x8x1xf32> to vector<4x8x8xf32>
    %112 = arith.divf %108, %111 : vector<4x8x8xf32>
    "tpu.trace_start"() <{level = 10 : i32, message = "hqk,khd->qhd"}> : () -> ()
    %cst_49 = arith.constant dense<0.000000e+00> : vector<4x8x8xf32>
    %113 = tpu.matmul %97, %112, %cst_49 {dimension_numbers = #tpu.dot_dimension_numbers<[0], [2], [2], [1], [0, 1, 0, 2, 1, 1], [1], [0]>} : vector<8x4x8xf32>, vector<4x8x8xf32>, vector<4x8x8xf32> -> vector<4x8x8xf32>
    %114 = tpu.transpose %113, [2, 0, 1] : vector<4x8x8xf32> -> vector<8x4x8xf32>
    "tpu.trace_stop"() : () -> ()
    %115 = vector.shape_cast %114 : vector<8x4x8xf32> to vector<8x32xf32>
    %c0_50 = arith.constant 0 : index
    %c224 = arith.constant 224 : index
    %116 = vector.load %arg5[%c0_50, %c224] : memref<32x448xf32, #tpu.memory_space<vmem>>, vector<32x32xf32>
    %cst_51 = arith.constant dense<0.000000e+00> : vector<8x32xf32>
    %117 = tpu.matmul %115, %116, %cst_51 {dimension_numbers = #tpu.dot_dimension_numbers<[1], [0], [0], [1], [0, 0, 1, 1], [], []>} : vector<8x32xf32>, vector<32x32xf32>, vector<8x32xf32> -> vector<8x32xf32>
    %c0_52 = arith.constant 0 : index
    %c224_53 = arith.constant 224 : index
    %118 = vector.load %arg7[%c0_52, %c224_53] : memref<1x672xf32, #tpu.memory_space<vmem>>, vector<1x32xf32>
    %119 = vector.broadcast %118 : vector<1x32xf32> to vector<8x32xf32>
    %120 = arith.addf %117, %119 : vector<8x32xf32>
    %121 = arith.addf %82, %120 : vector<8x32xf32>
    %c0_54 = arith.constant 0 : index
    %c544 = arith.constant 544 : index
    %122 = vector.load %arg7[%c0_54, %c544] : memref<1x672xf32, #tpu.memory_space<vmem>>, vector<1x32xf32>
    %c0_55 = arith.constant 0 : index
    %c576 = arith.constant 576 : index
    %123 = vector.load %arg7[%c0_55, %c576] : memref<1x672xf32, #tpu.memory_space<vmem>>, vector<1x32xf32>
    %cst_56 = arith.constant dense<0.000000e+00> : vector<8xf32>
    %124 = vector.multi_reduction <add>, %121, %cst_56 [1] : vector<8x32xf32> to vector<8xf32>
    %125 = vector.shape_cast %124 : vector<8xf32> to vector<8x1xf32>
    %cst_57 = arith.constant 3.200000e+01 : f32
    %126 = vector.broadcast %cst_57 : f32 to vector<8x1xf32>
    %127 = arith.divf %125, %126 : vector<8x1xf32>
    %128 = vector.broadcast %127 : vector<8x1xf32> to vector<8x32xf32>
    %129 = arith.subf %121, %128 : vector<8x32xf32>
    %130 = arith.mulf %129, %129 : vector<8x32xf32>
    %cst_58 = arith.constant dense<0.000000e+00> : vector<8xf32>
    %131 = vector.multi_reduction <add>, %130, %cst_58 [1] : vector<8x32xf32> to vector<8xf32>
    %132 = vector.shape_cast %131 : vector<8xf32> to vector<8x1xf32>
    %cst_59 = arith.constant 3.200000e+01 : f32
    %133 = vector.broadcast %cst_59 : f32 to vector<8x1xf32>
    %134 = arith.divf %132, %133 : vector<8x1xf32>
    %135 = vector.broadcast %127 : vector<8x1xf32> to vector<8x32xf32>
    %136 = arith.subf %121, %135 : vector<8x32xf32>
    %cst_60 = arith.constant 9.99999974E-6 : f32
    %137 = vector.broadcast %cst_60 : f32 to vector<8x1xf32>
    %138 = arith.addf %134, %137 : vector<8x1xf32>
    %139 = math.rsqrt %138 : vector<8x1xf32>
    %140 = vector.broadcast %139 : vector<8x1xf32> to vector<8x32xf32>
    %141 = arith.mulf %136, %140 : vector<8x32xf32>
    %142 = vector.broadcast %122 : vector<1x32xf32> to vector<8x32xf32>
    %143 = arith.mulf %141, %142 : vector<8x32xf32>
    %144 = vector.broadcast %123 : vector<1x32xf32> to vector<8x32xf32>
    %145 = arith.addf %143, %144 : vector<8x32xf32>
    %c0_61 = arith.constant 0 : index
    %c256 = arith.constant 256 : index
    %146 = vector.load %arg5[%c0_61, %c256] : memref<32x448xf32, #tpu.memory_space<vmem>>, vector<32x64xf32>
    %cst_62 = arith.constant dense<0.000000e+00> : vector<8x64xf32>
    %147 = tpu.matmul %145, %146, %cst_62 {dimension_numbers = #tpu.dot_dimension_numbers<[1], [0], [0], [1], [0, 0, 1, 1], [], []>} : vector<8x32xf32>, vector<32x64xf32>, vector<8x64xf32> -> vector<8x64xf32>
    %c0_63 = arith.constant 0 : index
    %c256_64 = arith.constant 256 : index
    %148 = vector.load %arg7[%c0_63, %c256_64] : memref<1x672xf32, #tpu.memory_space<vmem>>, vector<1x64xf32>
    %149 = vector.broadcast %148 : vector<1x64xf32> to vector<8x64xf32>
    %150 = arith.addf %147, %149 : vector<8x64xf32>
    %cst_65 = arith.constant 0.000000e+00 : f32
    %151 = vector.broadcast %cst_65 : f32 to vector<8x64xf32>
    %152 = arith.maximumf %150, %151 : vector<8x64xf32>
    %c0_66 = arith.constant 0 : index
    %c0_67 = arith.constant 0 : index
    %153 = vector.load %arg6[%c0_66, %c0_67] : memref<64x32xf32, #tpu.memory_space<vmem>>, vector<64x32xf32>
    %cst_68 = arith.constant dense<0.000000e+00> : vector<8x32xf32>
    %154 = tpu.matmul %152, %153, %cst_68 {dimension_numbers = #tpu.dot_dimension_numbers<[1], [0], [0], [1], [0, 0, 1, 1], [], []>} : vector<8x64xf32>, vector<64x32xf32>, vector<8x32xf32> -> vector<8x32xf32>
    %c0_69 = arith.constant 0 : index
    %c320 = arith.constant 320 : index
    %155 = vector.load %arg7[%c0_69, %c320] : memref<1x672xf32, #tpu.memory_space<vmem>>, vector<1x32xf32>
    %156 = vector.broadcast %155 : vector<1x32xf32> to vector<8x32xf32>
    %157 = arith.addf %154, %156 : vector<8x32xf32>
    %158 = arith.addf %145, %157 : vector<8x32xf32>
    %c0_70 = arith.constant 0 : index
    %c608 = arith.constant 608 : index
    %159 = vector.load %arg7[%c0_70, %c608] : memref<1x672xf32, #tpu.memory_space<vmem>>, vector<1x32xf32>
    %c0_71 = arith.constant 0 : index
    %c640 = arith.constant 640 : index
    %160 = vector.load %arg7[%c0_71, %c640] : memref<1x672xf32, #tpu.memory_space<vmem>>, vector<1x32xf32>
    %cst_72 = arith.constant dense<0.000000e+00> : vector<8xf32>
    %161 = vector.multi_reduction <add>, %158, %cst_72 [1] : vector<8x32xf32> to vector<8xf32>
    %162 = vector.shape_cast %161 : vector<8xf32> to vector<8x1xf32>
    %cst_73 = arith.constant 3.200000e+01 : f32
    %163 = vector.broadcast %cst_73 : f32 to vector<8x1xf32>
    %164 = arith.divf %162, %163 : vector<8x1xf32>
    %165 = vector.broadcast %164 : vector<8x1xf32> to vector<8x32xf32>
    %166 = arith.subf %158, %165 : vector<8x32xf32>
    %167 = arith.mulf %166, %166 : vector<8x32xf32>
    %cst_74 = arith.constant dense<0.000000e+00> : vector<8xf32>
    %168 = vector.multi_reduction <add>, %167, %cst_74 [1] : vector<8x32xf32> to vector<8xf32>
    %169 = vector.shape_cast %168 : vector<8xf32> to vector<8x1xf32>
    %cst_75 = arith.constant 3.200000e+01 : f32
    %170 = vector.broadcast %cst_75 : f32 to vector<8x1xf32>
    %171 = arith.divf %169, %170 : vector<8x1xf32>
    %172 = vector.broadcast %164 : vector<8x1xf32> to vector<8x32xf32>
    %173 = arith.subf %158, %172 : vector<8x32xf32>
    %cst_76 = arith.constant 9.99999974E-6 : f32
    %174 = vector.broadcast %cst_76 : f32 to vector<8x1xf32>
    %175 = arith.addf %171, %174 : vector<8x1xf32>
    %176 = math.rsqrt %175 : vector<8x1xf32>
    %177 = vector.broadcast %176 : vector<8x1xf32> to vector<8x32xf32>
    %178 = arith.mulf %173, %177 : vector<8x32xf32>
    %179 = vector.broadcast %159 : vector<1x32xf32> to vector<8x32xf32>
    %180 = arith.mulf %178, %179 : vector<8x32xf32>
    %181 = vector.broadcast %160 : vector<1x32xf32> to vector<8x32xf32>
    %182 = arith.addf %180, %181 : vector<8x32xf32>
    %c0_77 = arith.constant 0 : index
    %c320_78 = arith.constant 320 : index
    %183 = vector.load %arg5[%c0_77, %c320_78] : memref<32x448xf32, #tpu.memory_space<vmem>>, vector<32x128xf32>
    %cst_79 = arith.constant dense<0.000000e+00> : vector<8x128xf32>
    %184 = tpu.matmul %182, %183, %cst_79 {dimension_numbers = #tpu.dot_dimension_numbers<[1], [0], [0], [1], [0, 0, 1, 1], [], []>} : vector<8x32xf32>, vector<32x128xf32>, vector<8x128xf32> -> vector<8x128xf32>
    %c0_80 = arith.constant 0 : index
    %c352 = arith.constant 352 : index
    %185 = vector.load %arg7[%c0_80, %c352] : memref<1x672xf32, #tpu.memory_space<vmem>>, vector<1x128xf32>
    %186 = vector.broadcast %185 : vector<1x128xf32> to vector<8x128xf32>
    %187 = arith.addf %184, %186 : vector<8x128xf32>
    %c0_81 = arith.constant 0 : index
    %c0_82 = arith.constant 0 : index
    %c0_83 = arith.constant 0 : index
    %188 = vector.load %arg8[%c0_81, %c0_82, %c0_83] : memref<1x8x128xf32, #tpu.memory_space<vmem>>, vector<1x8x128xf32>
    %189 = vector.shape_cast %188 : vector<1x8x128xf32> to vector<8x128xf32>
    %190 = vector.shape_cast %187 : vector<8x128xf32> to vector<1x8x128xf32>
    tpu.vector_store %arg8[%c0_81, %c0_82, %c0_83], %190 {strides = array<i32>} : memref<1x8x128xf32, #tpu.memory_space<vmem>>, vector<1x8x128xf32>,
    %191 = tpu.transpose %112, [1, 0, 2] : vector<4x8x8xf32> -> vector<8x4x8xf32>
    %192 = vector.shape_cast %191 : vector<8x4x8xf32> to vector<8x32xf32>
    %cst_84 = arith.constant 0.000000e+00 : f32
    %193 = vector.broadcast %cst_84 : f32 to vector<8x96xf32>
    %194 = tpu.concatenate %192, %193 in 1 : vector<8x32xf32>, vector<8x96xf32> -> vector<8x128xf32>
    %c0_85 = arith.constant 0 : index
    %c0_86 = arith.constant 0 : index
    %c0_87 = arith.constant 0 : index
    %195 = vector.load %arg9[%c0_85, %c0_86, %c0_87] : memref<1x8x128xf32, #tpu.memory_space<vmem>>, vector<1x8x128xf32>
    %196 = vector.shape_cast %195 : vector<1x8x128xf32> to vector<8x128xf32>
    %197 = vector.shape_cast %194 : vector<8x128xf32> to vector<1x8x128xf32>
    tpu.vector_store %arg9[%c0_85, %c0_86, %c0_87], %197 {strides = array<i32>} : memref<1x8x128xf32, #tpu.memory_space<vmem>>, vector<1x8x128xf32>,
    return
  }
  func.func @transform_0(%arg0: i32) -> (i32, i32, i32) {
    %c0_i32 = arith.constant 0 : i32
    %c0_i32_0 = arith.constant 0 : i32
    %c0_i32_1 = arith.constant 0 : i32
    return %arg0, %c0_i32, %c0_i32_0 : i32, i32, i32
  }
  func.func @transform_1(%arg0: i32) -> (i32, i32, i32) {
    %c0_i32 = arith.constant 0 : i32
    %c0_i32_0 = arith.constant 0 : i32
    %c0_i32_1 = arith.constant 0 : i32
    return %arg0, %c0_i32, %c0_i32_0 : i32, i32, i32
  }
  func.func @transform_2(%arg0: i32) -> (i32, i32, i32) {
    %c0_i32 = arith.constant 0 : i32
    %c0_i32_0 = arith.constant 0 : i32
    %c0_i32_1 = arith.constant 0 : i32
    return %arg0, %c0_i32, %c0_i32_0 : i32, i32, i32
  }
  func.func @transform_3(%arg0: i32) -> (i32, i32, i32) {
    %c0_i32 = arith.constant 0 : i32
    %c0_i32_0 = arith.constant 0 : i32
    %c0_i32_1 = arith.constant 0 : i32
    return %arg0, %c0_i32, %c0_i32_0 : i32, i32, i32
  }
  func.func @transform_4(%arg0: i32) -> (i32, i32) {
    %c0_i32 = arith.constant 0 : i32
    %c0_i32_0 = arith.constant 0 : i32
    %c0_i32_1 = arith.constant 0 : i32
    return %c0_i32, %c0_i32_0 : i32, i32
  }
  func.func @transform_5(%arg0: i32) -> (i32, i32) {
    %c0_i32 = arith.constant 0 : i32
    %c0_i32_0 = arith.constant 0 : i32
    %c0_i32_1 = arith.constant 0 : i32
    return %c0_i32, %c0_i32_0 : i32, i32
  }
  func.func @transform_6(%arg0: i32) -> (i32, i32) {
    %c0_i32 = arith.constant 0 : i32
    %c0_i32_0 = arith.constant 0 : i32
    %c0_i32_1 = arith.constant 0 : i32
    return %c0_i32, %c0_i32_0 : i32, i32
  }
  func.func @transform_7(%arg0: i32) -> (i32, i32, i32) {
    %c0_i32 = arith.constant 0 : i32
    %c0_i32_0 = arith.constant 0 : i32
    %c0_i32_1 = arith.constant 0 : i32
    return %arg0, %c0_i32, %c0_i32_0 : i32, i32, i32
  }
  func.func @transform_8(%arg0: i32) -> (i32, i32, i32) {
    %c0_i32 = arith.constant 0 : i32
    %c0_i32_0 = arith.constant 0 : i32
    %c0_i32_1 = arith.constant 0 : i32
    return %arg0, %c0_i32, %c0_i32_0 : i32, i32, i32
  }
}

module attributes {stable_mosaic.version = 11 : i64} {
  func.func @_encoder_kernel(%arg0: i32, %arg1: memref<1x8x32xf32, #tpu.memory_space<vmem>>, %arg2: memref<1x1x8xf32, #tpu.memory_space<vmem>>, %arg3: memref<32x192xf32, #tpu.memory_space<vmem>>, %arg4: memref<64x32xf32, #tpu.memory_space<vmem>>, %arg5: memref<1x352xf32, #tpu.memory_space<vmem>>, %arg6: memref<1x8x128xf32, #tpu.memory_space<vmem>>) attributes {dimension_semantics = [#tpu.dimension_semantics<parallel>], iteration_bounds = array<i64: 2>, scalar_prefetch = 0 : i64, scratch_operands = 0 : i64, tpu.core_type = #tpu.core_type<tc>, window_params = [{transform_indices = @transform_0, window_bounds = array<i64: 1, 8, 32>}, {transform_indices = @transform_1, window_bounds = array<i64: 1, 1, 8>}, {pipeline_mode = #tpu.pipeline_mode<synchronous>, transform_indices = @transform_2, window_bounds = array<i64: 32, 192>}, {pipeline_mode = #tpu.pipeline_mode<synchronous>, transform_indices = @transform_3, window_bounds = array<i64: 64, 32>}, {pipeline_mode = #tpu.pipeline_mode<synchronous>, transform_indices = @transform_4, window_bounds = array<i64: 1, 352>}, {transform_indices = @transform_5, window_bounds = array<i64: 1, 8, 128>}]} {
    %c0 = arith.constant 0 : index
    %c0_0 = arith.constant 0 : index
    %c0_1 = arith.constant 0 : index
    %0 = vector.load %arg1[%c0, %c0_0, %c0_1] : memref<1x8x32xf32, #tpu.memory_space<vmem>>, vector<1x8x32xf32>
    %1 = vector.shape_cast %0 : vector<1x8x32xf32> to vector<8x32xf32>
    %c0_2 = arith.constant 0 : index
    %c0_3 = arith.constant 0 : index
    %c0_4 = arith.constant 0 : index
    %2 = vector.load %arg2[%c0_2, %c0_3, %c0_4] : memref<1x1x8xf32, #tpu.memory_space<vmem>>, vector<1x1x8xf32>
    %3 = vector.shape_cast %2 : vector<1x1x8xf32> to vector<1x8xf32>
    %cst = arith.constant 5.000000e-01 : f32
    %4 = vector.broadcast %cst : f32 to vector<1x8xf32>
    %5 = arith.cmpf ogt, %3, %4 : vector<1x8xf32>
    %cst_5 = arith.constant 0.000000e+00 : f32
    %cst_6 = arith.constant -1.000000e+09 : f32
    %6 = vector.broadcast %cst_5 : f32 to vector<1x8xf32>
    %7 = vector.broadcast %cst_6 : f32 to vector<1x8xf32>
    %8 = arith.select %5, %6, %7 : vector<1x8xi1>, vector<1x8xf32>
    %c0_7 = arith.constant 0 : index
    %c0_8 = arith.constant 0 : index
    %9 = vector.load %arg3[%c0_7, %c0_8] : memref<32x192xf32, #tpu.memory_space<vmem>>, vector<32x96xf32>
    %cst_9 = arith.constant dense<0.000000e+00> : vector<8x96xf32>
    %10 = tpu.matmul %1, %9, %cst_9 {dimension_numbers = #tpu.dot_dimension_numbers<[1], [0], [0], [1], [0, 0, 1, 1], [], []>} : vector<8x32xf32>, vector<32x96xf32>, vector<8x96xf32> -> vector<8x96xf32>
    %c0_10 = arith.constant 0 : index
    %c0_11 = arith.constant 0 : index
    %11 = vector.load %arg5[%c0_10, %c0_11] : memref<1x352xf32, #tpu.memory_space<vmem>>, vector<1x96xf32>
    %12 = vector.broadcast %11 : vector<1x96xf32> to vector<8x96xf32>
    %13 = arith.addf %10, %12 : vector<8x96xf32>
    %14 = vector.extract_strided_slice %13 {offsets = [0, 0], sizes = [8, 32], strides = [1, 1]} : vector<8x96xf32> to vector<8x32xf32>
    %15 = vector.extract_strided_slice %13 {offsets = [0, 32], sizes = [8, 32], strides = [1, 1]} : vector<8x96xf32> to vector<8x32xf32>
    %16 = vector.extract_strided_slice %13 {offsets = [0, 64], sizes = [8, 32], strides = [1, 1]} : vector<8x96xf32> to vector<8x32xf32>
    %17 = vector.shape_cast %14 : vector<8x32xf32> to vector<8x4x8xf32>
    %18 = vector.shape_cast %15 : vector<8x32xf32> to vector<8x4x8xf32>
    %19 = vector.shape_cast %16 : vector<8x32xf32> to vector<8x4x8xf32>
    "tpu.trace_start"() <{level = 10 : i32, message = "qhd,khd->hqk"}> : () -> ()
    %cst_12 = arith.constant dense<0.000000e+00> : vector<4x8x8xf32>
    %20 = tpu.matmul %17, %18, %cst_12 {dimension_numbers = #tpu.dot_dimension_numbers<[2], [2], [0], [0], [0, 1, 0, 0, 1, 0], [1], [1]>} : vector<8x4x8xf32>, vector<8x4x8xf32>, vector<4x8x8xf32> -> vector<4x8x8xf32>
    "tpu.trace_stop"() : () -> ()
    %cst_13 = arith.constant 0.353553385 : f32
    %21 = vector.broadcast %cst_13 : f32 to vector<4x8x8xf32>
    %22 = arith.mulf %20, %21 : vector<4x8x8xf32>
    %23 = vector.shape_cast %8 : vector<1x8xf32> to vector<1x1x8xf32>
    %24 = vector.broadcast %23 : vector<1x1x8xf32> to vector<4x8x8xf32>
    %25 = arith.addf %22, %24 : vector<4x8x8xf32>
    %cst_14 = arith.constant dense<0xFF800000> : vector<4x8xf32>
    %26 = vector.multi_reduction <maximumf>, %25, %cst_14 [2] : vector<4x8x8xf32> to vector<4x8xf32>
    %27 = vector.shape_cast %26 : vector<4x8xf32> to vector<4x8x1xf32>
    %28 = vector.broadcast %27 : vector<4x8x1xf32> to vector<4x8x8xf32>
    %29 = arith.subf %25, %28 : vector<4x8x8xf32>
    %30 = math.exp %29 : vector<4x8x8xf32>
    %cst_15 = arith.constant dense<0.000000e+00> : vector<4x8xf32>
    %31 = vector.multi_reduction <add>, %30, %cst_15 [2] : vector<4x8x8xf32> to vector<4x8xf32>
    %32 = vector.shape_cast %31 : vector<4x8xf32> to vector<4x8x1xf32>
    %33 = tpu.reciprocal %32 {approx = true} : vector<4x8x1xf32> -> vector<4x8x1xf32>
    %34 = vector.broadcast %33 : vector<4x8x1xf32> to vector<4x8x8xf32>
    %35 = arith.mulf %30, %34 : vector<4x8x8xf32>
    "tpu.trace_start"() <{level = 10 : i32, message = "hqk,khd->qhd"}> : () -> ()
    %cst_16 = arith.constant dense<0.000000e+00> : vector<4x8x8xf32>
    %36 = tpu.matmul %19, %35, %cst_16 {dimension_numbers = #tpu.dot_dimension_numbers<[0], [2], [2], [1], [0, 1, 0, 2, 1, 1], [1], [0]>} : vector<8x4x8xf32>, vector<4x8x8xf32>, vector<4x8x8xf32> -> vector<4x8x8xf32>
    %37 = tpu.transpose %36, [2, 0, 1] : vector<4x8x8xf32> -> vector<8x4x8xf32>
    "tpu.trace_stop"() : () -> ()
    %38 = vector.shape_cast %37 : vector<8x4x8xf32> to vector<8x32xf32>
    %c0_17 = arith.constant 0 : index
    %c96 = arith.constant 96 : index
    %39 = vector.load %arg3[%c0_17, %c96] : memref<32x192xf32, #tpu.memory_space<vmem>>, vector<32x32xf32>
    %cst_18 = arith.constant dense<0.000000e+00> : vector<8x32xf32>
    %40 = tpu.matmul %38, %39, %cst_18 {dimension_numbers = #tpu.dot_dimension_numbers<[1], [0], [0], [1], [0, 0, 1, 1], [], []>} : vector<8x32xf32>, vector<32x32xf32>, vector<8x32xf32> -> vector<8x32xf32>
    %c0_19 = arith.constant 0 : index
    %c96_20 = arith.constant 96 : index
    %41 = vector.load %arg5[%c0_19, %c96_20] : memref<1x352xf32, #tpu.memory_space<vmem>>, vector<1x32xf32>
    %42 = vector.broadcast %41 : vector<1x32xf32> to vector<8x32xf32>
    %43 = arith.addf %40, %42 : vector<8x32xf32>
    %44 = arith.addf %1, %43 : vector<8x32xf32>
    %c0_21 = arith.constant 0 : index
    %c224 = arith.constant 224 : index
    %45 = vector.load %arg5[%c0_21, %c224] : memref<1x352xf32, #tpu.memory_space<vmem>>, vector<1x32xf32>
    %c0_22 = arith.constant 0 : index
    %c256 = arith.constant 256 : index
    %46 = vector.load %arg5[%c0_22, %c256] : memref<1x352xf32, #tpu.memory_space<vmem>>, vector<1x32xf32>
    %cst_23 = arith.constant dense<0.000000e+00> : vector<8xf32>
    %47 = vector.multi_reduction <add>, %44, %cst_23 [1] : vector<8x32xf32> to vector<8xf32>
    %48 = vector.shape_cast %47 : vector<8xf32> to vector<8x1xf32>
    %cst_24 = arith.constant 3.200000e+01 : f32
    %49 = vector.broadcast %cst_24 : f32 to vector<8x1xf32>
    %50 = arith.divf %48, %49 : vector<8x1xf32>
    %51 = vector.broadcast %50 : vector<8x1xf32> to vector<8x32xf32>
    %52 = arith.subf %44, %51 : vector<8x32xf32>
    %53 = arith.mulf %52, %52 : vector<8x32xf32>
    %cst_25 = arith.constant dense<0.000000e+00> : vector<8xf32>
    %54 = vector.multi_reduction <add>, %53, %cst_25 [1] : vector<8x32xf32> to vector<8xf32>
    %55 = vector.shape_cast %54 : vector<8xf32> to vector<8x1xf32>
    %cst_26 = arith.constant 3.200000e+01 : f32
    %56 = vector.broadcast %cst_26 : f32 to vector<8x1xf32>
    %57 = arith.divf %55, %56 : vector<8x1xf32>
    %58 = vector.broadcast %50 : vector<8x1xf32> to vector<8x32xf32>
    %59 = arith.subf %44, %58 : vector<8x32xf32>
    %cst_27 = arith.constant 9.99999974E-6 : f32
    %60 = vector.broadcast %cst_27 : f32 to vector<8x1xf32>
    %61 = arith.addf %57, %60 : vector<8x1xf32>
    %62 = math.rsqrt %61 : vector<8x1xf32>
    %63 = vector.broadcast %62 : vector<8x1xf32> to vector<8x32xf32>
    %64 = arith.mulf %59, %63 : vector<8x32xf32>
    %65 = vector.broadcast %45 : vector<1x32xf32> to vector<8x32xf32>
    %66 = arith.mulf %64, %65 : vector<8x32xf32>
    %67 = vector.broadcast %46 : vector<1x32xf32> to vector<8x32xf32>
    %68 = arith.addf %66, %67 : vector<8x32xf32>
    %c0_28 = arith.constant 0 : index
    %c128 = arith.constant 128 : index
    %69 = vector.load %arg3[%c0_28, %c128] : memref<32x192xf32, #tpu.memory_space<vmem>>, vector<32x64xf32>
    %cst_29 = arith.constant dense<0.000000e+00> : vector<8x64xf32>
    %70 = tpu.matmul %68, %69, %cst_29 {dimension_numbers = #tpu.dot_dimension_numbers<[1], [0], [0], [1], [0, 0, 1, 1], [], []>} : vector<8x32xf32>, vector<32x64xf32>, vector<8x64xf32> -> vector<8x64xf32>
    %c0_30 = arith.constant 0 : index
    %c128_31 = arith.constant 128 : index
    %71 = vector.load %arg5[%c0_30, %c128_31] : memref<1x352xf32, #tpu.memory_space<vmem>>, vector<1x64xf32>
    %72 = vector.broadcast %71 : vector<1x64xf32> to vector<8x64xf32>
    %73 = arith.addf %70, %72 : vector<8x64xf32>
    %cst_32 = arith.constant 0.000000e+00 : f32
    %74 = vector.broadcast %cst_32 : f32 to vector<8x64xf32>
    %75 = arith.maximumf %73, %74 : vector<8x64xf32>
    %c0_33 = arith.constant 0 : index
    %c0_34 = arith.constant 0 : index
    %76 = vector.load %arg4[%c0_33, %c0_34] : memref<64x32xf32, #tpu.memory_space<vmem>>, vector<64x32xf32>
    %cst_35 = arith.constant dense<0.000000e+00> : vector<8x32xf32>
    %77 = tpu.matmul %75, %76, %cst_35 {dimension_numbers = #tpu.dot_dimension_numbers<[1], [0], [0], [1], [0, 0, 1, 1], [], []>} : vector<8x64xf32>, vector<64x32xf32>, vector<8x32xf32> -> vector<8x32xf32>
    %c0_36 = arith.constant 0 : index
    %c192 = arith.constant 192 : index
    %78 = vector.load %arg5[%c0_36, %c192] : memref<1x352xf32, #tpu.memory_space<vmem>>, vector<1x32xf32>
    %79 = vector.broadcast %78 : vector<1x32xf32> to vector<8x32xf32>
    %80 = arith.addf %77, %79 : vector<8x32xf32>
    %81 = arith.addf %68, %80 : vector<8x32xf32>
    %c0_37 = arith.constant 0 : index
    %c288 = arith.constant 288 : index
    %82 = vector.load %arg5[%c0_37, %c288] : memref<1x352xf32, #tpu.memory_space<vmem>>, vector<1x32xf32>
    %c0_38 = arith.constant 0 : index
    %c320 = arith.constant 320 : index
    %83 = vector.load %arg5[%c0_38, %c320] : memref<1x352xf32, #tpu.memory_space<vmem>>, vector<1x32xf32>
    %cst_39 = arith.constant dense<0.000000e+00> : vector<8xf32>
    %84 = vector.multi_reduction <add>, %81, %cst_39 [1] : vector<8x32xf32> to vector<8xf32>
    %85 = vector.shape_cast %84 : vector<8xf32> to vector<8x1xf32>
    %cst_40 = arith.constant 3.200000e+01 : f32
    %86 = vector.broadcast %cst_40 : f32 to vector<8x1xf32>
    %87 = arith.divf %85, %86 : vector<8x1xf32>
    %88 = vector.broadcast %87 : vector<8x1xf32> to vector<8x32xf32>
    %89 = arith.subf %81, %88 : vector<8x32xf32>
    %90 = arith.mulf %89, %89 : vector<8x32xf32>
    %cst_41 = arith.constant dense<0.000000e+00> : vector<8xf32>
    %91 = vector.multi_reduction <add>, %90, %cst_41 [1] : vector<8x32xf32> to vector<8xf32>
    %92 = vector.shape_cast %91 : vector<8xf32> to vector<8x1xf32>
    %cst_42 = arith.constant 3.200000e+01 : f32
    %93 = vector.broadcast %cst_42 : f32 to vector<8x1xf32>
    %94 = arith.divf %92, %93 : vector<8x1xf32>
    %95 = vector.broadcast %87 : vector<8x1xf32> to vector<8x32xf32>
    %96 = arith.subf %81, %95 : vector<8x32xf32>
    %cst_43 = arith.constant 9.99999974E-6 : f32
    %97 = vector.broadcast %cst_43 : f32 to vector<8x1xf32>
    %98 = arith.addf %94, %97 : vector<8x1xf32>
    %99 = math.rsqrt %98 : vector<8x1xf32>
    %100 = vector.broadcast %99 : vector<8x1xf32> to vector<8x32xf32>
    %101 = arith.mulf %96, %100 : vector<8x32xf32>
    %102 = vector.broadcast %82 : vector<1x32xf32> to vector<8x32xf32>
    %103 = arith.mulf %101, %102 : vector<8x32xf32>
    %104 = vector.broadcast %83 : vector<1x32xf32> to vector<8x32xf32>
    %105 = arith.addf %103, %104 : vector<8x32xf32>
    %cst_44 = arith.constant 0.000000e+00 : f32
    %106 = vector.broadcast %cst_44 : f32 to vector<8x96xf32>
    %107 = tpu.concatenate %105, %106 in 1 : vector<8x32xf32>, vector<8x96xf32> -> vector<8x128xf32>
    %c0_45 = arith.constant 0 : index
    %c0_46 = arith.constant 0 : index
    %c0_47 = arith.constant 0 : index
    %108 = vector.load %arg6[%c0_45, %c0_46, %c0_47] : memref<1x8x128xf32, #tpu.memory_space<vmem>>, vector<1x8x128xf32>
    %109 = vector.shape_cast %108 : vector<1x8x128xf32> to vector<8x128xf32>
    %110 = vector.shape_cast %107 : vector<8x128xf32> to vector<1x8x128xf32>
    tpu.vector_store %arg6[%c0_45, %c0_46, %c0_47], %110 {strides = array<i32>} : memref<1x8x128xf32, #tpu.memory_space<vmem>>, vector<1x8x128xf32>,
    return
  }
  func.func @transform_0(%arg0: i32) -> (i32, i32, i32) {
    %c0_i32 = arith.constant 0 : i32
    %c0_i32_0 = arith.constant 0 : i32
    %c0_i32_1 = arith.constant 0 : i32
    return %arg0, %c0_i32, %c0_i32_0 : i32, i32, i32
  }
  func.func @transform_1(%arg0: i32) -> (i32, i32, i32) {
    %c0_i32 = arith.constant 0 : i32
    %c0_i32_0 = arith.constant 0 : i32
    %c0_i32_1 = arith.constant 0 : i32
    return %arg0, %c0_i32, %c0_i32_0 : i32, i32, i32
  }
  func.func @transform_2(%arg0: i32) -> (i32, i32) {
    %c0_i32 = arith.constant 0 : i32
    %c0_i32_0 = arith.constant 0 : i32
    %c0_i32_1 = arith.constant 0 : i32
    return %c0_i32, %c0_i32_0 : i32, i32
  }
  func.func @transform_3(%arg0: i32) -> (i32, i32) {
    %c0_i32 = arith.constant 0 : i32
    %c0_i32_0 = arith.constant 0 : i32
    %c0_i32_1 = arith.constant 0 : i32
    return %c0_i32, %c0_i32_0 : i32, i32
  }
  func.func @transform_4(%arg0: i32) -> (i32, i32) {
    %c0_i32 = arith.constant 0 : i32
    %c0_i32_0 = arith.constant 0 : i32
    %c0_i32_1 = arith.constant 0 : i32
    return %c0_i32, %c0_i32_0 : i32, i32
  }
  func.func @transform_5(%arg0: i32) -> (i32, i32, i32) {
    %c0_i32 = arith.constant 0 : i32
    %c0_i32_0 = arith.constant 0 : i32
    %c0_i32_1 = arith.constant 0 : i32
    return %arg0, %c0_i32, %c0_i32_0 : i32, i32, i32
  }
}

</mosaic_0001>

<bundles_post_ra>
// kernel: transformer_forward.2
= control target key start
LH: loop header
LB: loop body
LE: loop exit
PB: predicated region body
PF: predicated region fallthrough
CT: control target
= control target key end

     0   :  { %s2226_s18 = smov 0   ;;  %s2449_s0 = inlined_call_operand.vmem [shape: f32[2,8,32], index: 0, kind: input, shape index: {}]   ;;  %s2450_s1 = inlined_call_operand.vmem [shape: f32[2,1,8], index: 1, kind: input, shape index: {}]   ;;  %s2451_s2 = inlined_call_operand.vmem [shape: f32[32,192], index: 2, kind: input, shape index: {}]   ;;  %s2452_s3 = inlined_call_operand.vmem [shape: f32[64,32], index: 3, kind: input, shape index: {}]   ;;  %s2453_s4 = inlined_call_operand.vmem [shape: f32[1,352], index: 4, kind: input, shape index: {}]   ;;  %s2454_s5 = inlined_call_operand.vmem [shape: f32[2,8,128], index: 5, kind: output, shape index: {}]  }
   0x1 LB: > { %s1927_s19 = sadd.s32 4294967295, %s2179_s18   ;;  %p1931_p0 = scmp.ge.s32.totalorder %s2179_s18, 1  ;;  %s2179_s18 = sphi %s2226_s18, %s15_s18  }
   0x2   : > { %p194_p1 = scmp.lt.s32.totalorder %s2179_s18, 3 }
   0x4   : > { %p195_p2 = pnand %p1931_p0, %p194_p1 }
   0x5   : > { %v2237_v0 = vld [vmem:[%s2451_s2] sm:$0xff] (!%p195_p2)  ;;  %v2242_v1 = vld [vmem:[%s2451_s2 + $0x10] sm:$0xff] (!%p195_p2)  ;;  %v2181_v3 = vmov (!%p195_p2), 0.0|0.0   ;;  %vm2182_vm0 = vmmov (!%p195_p2), 0   ;;  %v2183_v6 = vmov (!%p195_p2), 0.0   ;;  %p223_p3 = scmp.lt.s32.totalorder (!%p195_p2), %s1927_s19, 1  ;;  %v764_v24 = vlaneseq (!%p195_p2) }
   0x6   : > { %198 = sbr.rel (%p195_p2) target bundleno = 2917 (0xb65), region = 40  ;;  %v2247_v2 = vld [vmem:[%s2451_s2 + $0x20] sm:$0xff] (!%p195_p2)  ;;  %2090 = vmatprep.subr.bf16.mxu0 (!%p195_p2), %v2181_v3  ;;  %v2091_v4 = vpack.c.bf16 (!%p195_p2), %v2242_v1, %v2237_v0  ;;  %v2255_v5 = vld [vmem:[%s2451_s2 + $0x30] sm:$0xff] (!%p195_p2)  ;;  %2006 = vmatprep.mubr.msk.f32.mxu0 (!%p195_p2), %vm2182_vm0, %v2183_v6  ;;  %vm249_vm1 = vcmask (!%p195_p2), 261120   ;;  %s2184_s9 = smov (!%p195_p2), 104   ;;  %vm470_vm2 = vcmask (!%p195_p2), 64512  }
   0x7   : > { %2009 = vmatprep.subr.mxu1 (!%p195_p2), %v2183_v6  ;;  %2011 = vmatprep.mubr.msk.f32.mxu1 (!%p195_p2), %vm2182_vm0, %v2183_v6  ;;  %v2094_v7 = vpack.c.bf16 (!%p195_p2), %v2255_v5, %v2247_v2  ;;  %v2283_v9 = vld [vmem:[%s2453_s4] ss:$0 sm:$0xff] (!%p195_p2)  ;;  %s2185_s10 = smov (!%p195_p2), 120   ;;  %s2186_s11 = smov (!%p195_p2), 96   ;;  %v2329_v26 = vshrl.u32 (!%p195_p2), %v764_v24, 7  ;;  %vm1538_vm4 = vcmask (!%p195_p2), 130048  }
   0x8   : > { %2092 = vmatpush3.bf16.msra.mxu0 (!%p195_p2), %v2091_v4  ;;  %s2187_s12 = smov (!%p195_p2), 112   ;;  %v2188_v28 = vmov (!%p195_p2), -1e+09   ;;  %s2189_s16 = smov (!%p195_p2), 64   ;;  %vm1540_vm5 = vcmask (!%p195_p2), 195584   ;;  %vm1767_vm6 = vcmask (!%p195_p2), 523264  }
   0x9   : > { %2093 = vmatprep.subr.bf16.mxu0 (!%p195_p2), %v2181_v3  ;;  %v766_v27 = vsub.s32 (!%p195_p2), 0, %v2329_v26  ;;  %s2190_s17 = smov (!%p195_p2), 32   ;;  %s2193_s20 = smov (!%p195_p2), 8  }
   0xa   : > { %s2194_s21 = smov (!%p195_p2), 16   ;;  %s2195_s22 = smov (!%p195_p2), 24  }
   0xc   : > { %2095 = vmatpush3.bf16.msra.mxu0 (!%p195_p2), %v2094_v7 }
   0xd   : > { %s2456_s19 = smov (!%p223_p3, %s1927_s19), 1  ;;  %2024 = vmatprep.subr.mxu0 %v2183_v6 }
   0xe   : > { %s1932_s28 = sshll.u32 %s2456_s19, 3  ;;  %s229_s15 = scalar_lea.vmem %s2450_s1, %s2456_s19 }
   0xf   : > { %s226_s6 = scalar_lea.vmem %s2449_s0, %s1932_s28  ;;  %v235_v25 = vld [vmem:[%s229_s15] sm:$0x1]  ;;  %s233_s8 = scalar_lea.vmem %s2454_s5, %s1932_s28 }
  0x10   : > { %v2273_v8 = vld [vmem:[%s226_s6] sm:$0xff]  ;;  %vm236_vm3 = vcmp.gt.f32.partialorder %v235_v25, 0.5 }
  0x11   : > { %2007 = vmatmul.mubr.msk.f32.vlgmr.msra.gmra.mrb[0].mxu0 %vm249_vm1, %v2273_v8  ;;  %v237_v29 = vsel %vm236_vm3, 0.0, %v2188_v28 }
  0x12   : > { %2026 = vmatprep.mubr.msk.f32.mxu0 %vm2182_vm0, %v2183_v6  ;;  %v767_v30 = vrot.slane %v237_v29, %v766_v27 }
  0xe4   : > { %v319_v10 = vpop.f32.mrb[0].mxu0 }
  0xe5   : > { %v2286_v11 = vadd.f32 %v2283_v9, %v319_v10  ;;  %v2008_v12 = vpop.f32.mrb[1].mxu0 }
  0xe7   : > { %328 = vrot.lane.b32.xlu1 %v2286_v11, %s2184_s9  ;;  %324 = vrot.lane.b32.xlu0 %v2286_v11, %s2185_s10 }
  0xeb   : > { %330 = vrot.lane.b32.xlu1 %v2286_v11, %s2186_s11  ;;  %326 = vrot.lane.b32.xlu0 %v2286_v11, %s2187_s12 }
 0x159   : > { %v2293_v13 = vpop.permute.xlu0 %324  ;;  %v2297_v14 = vpop.permute.xlu1 %328 }
 0x15a   : > { %332 = vrot.lane.b32.xlu0 %v2293_v13, %s2186_s11 }
 0x15d   : > { %v2299_v15 = vpop.permute.xlu0 %326  ;;  %v331_v16 = vpop.permute.xlu1 %330 }
 0x15e   : > { %336 = vrot.lane.b32.xlu0 %v2297_v14, %s2186_s11  ;;  %334 = vrot.lane.b32.xlu1 %v2299_v15, %s2186_s11 }
 0x187   : > { %342 = vxpose.xlu1.b32.start.end [1/1] (short) (narrow) %v331_v16, 8 }
 0x1cc   : > { %v333_v17 = vpop.permute.xlu0 %332 }
 0x1cd   : > { %374 = vxpose.xlu0.b32.start.end [1/1] (short) (narrow) %v333_v17, 8 }
 0x1d0   : > { %v335_v18 = vpop.permute.xlu1 %334  ;;  %v337_v19 = vpop.permute.xlu0 %336 }
 0x1d1   : > { %406 = vxpose.xlu0.b32.start.end [1/1] (short) (narrow) %v335_v18, 8 }
 0x1d5   : > { %438 = vxpose.xlu0.b32.start.end [1/1] (short) (narrow) %v337_v19, 8 }
 0x207   : > { %v358_v20 = vpop.trf.xlu1 }
 0x208   : > { %2010 = vmatpush3.msra.mxu1 %v358_v20 }
 0x209   : > { %2012 = vmatmul.mubr.msk.f32.vlgmr.msra.gmra.mrb[0].mxu1 %vm470_vm2, %v2286_v11  ;;  %2014 = vmatprep.subr.mxu1 %v2183_v6 }
 0x20a   : > { %2016 = vmatprep.mubr.msk.f32.mxu1 %vm2182_vm0, %v2183_v6 }
 0x24d   : > { %v390_v21 = vpop.trf.xlu0 }
 0x24e   : > { %2015 = vmatpush3.msra.mxu1 %v390_v21 }
 0x24f   : > { %2017 = vmatmul.mubr.msk.f32.vlgmr.msra.gmra.mrb[2].mxu1 %vm470_vm2, %v2293_v13  ;;  %2019 = vmatprep.subr.mxu1 %v2183_v6 }
 0x250   : > { %2021 = vmatprep.mubr.msk.f32.mxu1 %vm2182_vm0, %v2183_v6 }
 0x251   : > { %v422_v22 = vpop.trf.xlu0 }
 0x252   : > { %2020 = vmatpush3.msra.mxu1 %v422_v22 }
 0x253   : > { %2022 = vmatmul.mubr.msk.f32.vlgmr.msra.gmra.mrb[4].mxu1 %vm470_vm2, %v2299_v15  ;;  %2029 = vmatprep.subr.mxu1 %v2183_v6 }
 0x254   : > { %2031 = vmatprep.mubr.msk.f32.mxu1 %vm2182_vm0, %v2183_v6 }
 0x255   : > { %v454_v23 = vpop.trf.xlu0 }
 0x256   : > { %2025 = vmatpush3.msra.mxu0 %v454_v23 }
 0x257   : > { %2027 = vmatmul.mubr.msk.f32.vlgmr.msra.gmra.mrb[2].mxu0 %vm470_vm2, %v2297_v14  ;;  %2034 = vmatprep.subr.mxu0 %v2183_v6 }
 0x258   : > { %2036 = vmatprep.mubr.msk.f32.mxu0 %vm2182_vm0, %v2183_v6 }
 0x2dc   : > { %v539_v31 = vpop.f32.mrb[0].mxu1 }
 0x2dd   : > { %v759_v32 = vmul.f32 0.35355338, %v539_v31  ;;  %v2013_v33 = vpop.f32.mrb[1].mxu1 }
 0x2df   : > { %v769_v34 = vadd.f32 %v767_v30, %v759_v32 }
 0x2e1   : > { %v773_v35 = vsel %vm470_vm2, %v769_v34, -inf }
 0x2e2   : > { %774 = vmax.xlane.f32.xlu1 %v773_v35 }
 0x322   : > { %v611_v36 = vpop.f32.mrb[2].mxu1 }
 0x323   : > { %v760_v37 = vmul.f32 0.35355338, %v611_v36  ;;  %v2018_v38 = vpop.f32.mrb[3].mxu1 }
 0x325   : > { %v770_v39 = vadd.f32 %v767_v30, %v760_v37 }
 0x326   : > { %v683_v40 = vpop.f32.mrb[4].mxu1 }
 0x327   : > { %v761_v41 = vmul.f32 0.35355338, %v683_v40  ;;  %v2023_v42 = vpop.f32.mrb[5].mxu1  ;;  %v776_v43 = vsel %vm470_vm2, %v770_v39, -inf }
 0x328   : > { %777 = vmax.xlane.f32.xlu0 %v776_v43 }
 0x329   : > { %v771_v44 = vadd.f32 %v767_v30, %v761_v41 }
 0x32a   : > { %v755_v45 = vpop.f32.mrb[2].mxu0 }
 0x32b   : > { %v762_v46 = vmul.f32 0.35355338, %v755_v45  ;;  %v2028_v47 = vpop.f32.mrb[3].mxu0  ;;  %v779_v48 = vsel %vm470_vm2, %v771_v44, -inf  ;;  %v2148_v45 = vpack.i.bf16 %v2255_v5, %v2247_v2 }
 0x32c   : > { %780 = vmax.xlane.f32.xlu1 %v779_v48  ;;  %v2191_v47 = vmov 1983009808  }
 0x32d   : > { %v772_v49 = vadd.f32 %v767_v30, %v762_v46  ;;  %v1392_v48 = vunpack.c.l.s4 %v2191_v47 }
 0x32f   : > { %v782_v50 = vsel %vm470_vm2, %v772_v49, -inf }
 0x330   : > { %783 = vmax.xlane.f32.xlu1 %v782_v50 }
 0x33e   : > { %817 = vrot.lane.b32.xlu0 %v2286_v11, %s2189_s16 }
 0x341   : > { %819 = vrot.lane.b32.xlu1 %v2293_v13, %s2189_s16 }
 0x342   : > { %823 = vrot.lane.b32.xlu0 %v2297_v14, %s2189_s16 }
 0x345   : > { %821 = vrot.lane.b32.xlu1 %v2299_v15, %s2189_s16 }
 0x36f   : > { %v775_v51 = vpop.xlane.xlu1 %774 }
 0x370   : > { %v785_v52 = vsub.f32 %v769_v34, %v775_v51  ;;  %v1393_v51 = vunpack.c.0.s8 %v1392_v48 }
 0x372   : > { %v789_v53 = vmul.f32 1.442695, %v785_v52 }
 0x374   : > { %2153 = vpow2.f32 %v789_v53 }
 0x37e   : > { %v2154_v54 = vpop.eup %2153 }
 0x37f   : > { %v797_v55 = vsel %vm470_vm2, %v2154_v54, 0.0 }
 0x380   : > { %798 = vadd.xlane.f32.xlu1 %v797_v55 }
 0x3b5   : > { %v778_v56 = vpop.xlane.xlu0 %777 }
 0x3b6   : > { %v786_v57 = vsub.f32 %v770_v39, %v778_v56 }
 0x3b8   : > { %v791_v58 = vmul.f32 1.442695, %v786_v57 }
 0x3b9   : > { %v781_v59 = vpop.xlane.xlu1 %780  ;;  %v818_v16 = vpop.permute.xlu0 %817 }
 0x3ba   : > { %2155 = vpow2.f32 %v791_v58  ;;  %v787_v60 = vsub.f32 %v771_v44, %v781_v59  ;;  %v2143_v44 = vpack.i.bf16 %v2242_v1, %v2237_v0  ;;  %v1396_v1 = vsub.s32 %v1393_v51, %v2329_v26 }
 0x3bc   : > { %v793_v61 = vmul.f32 1.442695, %v787_v60 }
 0x3bd   : > { %v784_v62 = vpop.xlane.xlu1 %783  ;;  %v824_v18 = vpop.permute.xlu0 %823 }
 0x3be   : > { %2157 = vpow2.f32 %v793_v61  ;;  %v788_v63 = vsub.f32 %v772_v49, %v784_v62  ;;  %v2192_v49 = vmov 1934713408  }
 0x3bf   : > { %v1424_v50 = vunpack.c.l.s4 %v2192_v49 }
 0x3c0   : > { %v795_v4 = vmul.f32 1.442695, %v788_v63 }
 0x3c1   : > { %v820_v15 = vpop.permute.xlu1 %819  ;;  %v1425_v0 = vunpack.c.0.s8 %v1424_v50 }
 0x3c2   : > { %2159 = vpow2.f32 %v795_v4 }
 0x3c3   : > { %v1428_v57 = vsub.s32 %v1425_v0, %v2329_v26 }
 0x3c4   : > { %v2156_v7 = vpop.eup %2155 }
 0x3c5   : > { %v800_v10 = vsel %vm470_vm2, %v2156_v7, 0.0  ;;  %v822_v17 = vpop.permute.xlu1 %821 }
 0x3c6   : > { %801 = vadd.xlane.f32.xlu0 %v800_v10 }
 0x3c8   : > { %v2158_v11 = vpop.eup %2157 }
 0x3c9   : > { %v803_v12 = vsel %vm470_vm2, %v2158_v11, 0.0 }
 0x3ca   : > { %804 = vadd.xlane.f32.xlu0 %v803_v12 }
 0x3cc   : > { %v2160_v13 = vpop.eup %2159 }
 0x3cd   : > { %v806_v14 = vsel %vm470_vm2, %v2160_v13, 0.0 }
 0x3ce   : > { %807 = vadd.xlane.f32.xlu1 %v806_v14 }
 0x3f7   : > { %829 = vxpose.xlu0.b32.start.end [1/1] (short) (narrow) %v818_v16, 8 }
 0x3fb   : > { %893 = vxpose.xlu0.b32.start.end [1/1] (short) (narrow) %v822_v17, 8 }
 0x3ff   : > { %925 = vxpose.xlu0.b32.start.end [1/1] (short) (narrow) %v824_v18, 8 }
 0x401   : > { %861 = vxpose.xlu1.b32.start.end [1/1] (short) (narrow) %v820_v15, 8 }
 0x40d   : > { %v799_v19 = vpop.xlane.xlu1 %798 }
 0x40e   : > { %2161 = vrcp.f32 %v799_v19 }
 0x418   : > { %v2162_v20 = vpop.eup %2161 }
 0x419   : > { %v813_v21 = vmul.f32 %v2162_v20, %v2154_v54 }
 0x41b   : > { %2030 = vmatpush3.xpose.msk.msra.mxu1 %vm470_vm2, %v813_v21 }
 0x41c   : > { %2039 = vmatprep.subr.mxu1 %v2183_v6 }
 0x453   : > { %v802_v22 = vpop.xlane.xlu0 %801 }
 0x454   : > { %2163 = vrcp.f32 %v802_v22 }
 0x457   : > { %v805_v25 = vpop.xlane.xlu0 %804 }
 0x458   : > { %2165 = vrcp.f32 %v805_v25 }
 0x45b   : > { %v808_v27 = vpop.xlane.xlu1 %807 }
 0x45c   : > { %2167 = vrcp.f32 %v808_v27 }
 0x45e   : > { %v2164_v23 = vpop.eup %2163 }
 0x45f   : > { %v814_v24 = vmul.f32 %v2164_v23, %v2156_v7 }
 0x461   : > { %2035 = vmatpush3.xpose.msk.msra.mxu0 %vm470_vm2, %v814_v24 }
 0x462   : > { %2044 = vmatprep.subr.mxu0 %v2183_v6  ;;  %v2166_v28 = vpop.eup %2165 }
 0x463   : > { %v815_v29 = vmul.f32 %v2166_v28, %v2158_v11 }
 0x466   : > { %v2168_v32 = vpop.eup %2167 }
 0x467   : > { %v816_v33 = vmul.f32 %v2168_v32, %v2160_v13 }
 0x477   : > { %v845_v30 = vpop.trf.xlu0 }
 0x478   : > { %2032 = vmatmul.mubr.msk.f32.vlgmr.msra.gmra.mrb[6].mxu1 %vm470_vm2, %v845_v30 }
 0x479   : > { %2040 = vmatpush3.xpose.msk.msra.mxu1 %vm470_vm2, %v815_v29  ;;  %2041 = vmatprep.mubr.msk.f32.mxu1 %vm2182_vm0, %v2183_v6 }
 0x47a   : > { %2108 = vmatprep.subr.bf16.mxu1 %v2181_v3 }
 0x47b   : > { %v909_v31 = vpop.trf.xlu0 }
 0x47c   : > { %2042 = vmatmul.mubr.msk.f32.vlgmr.msra.gmra.mrb[8].mxu1 %vm470_vm2, %v909_v31 }
 0x47d   : > { %2087 = vmatprep.mubr.msk.f32.mxu1 %vm2182_vm0, %v2183_v6 }
 0x47f   : > { %v941_v35 = vpop.trf.xlu0 }
 0x481   : > { %v877_v34 = vpop.trf.xlu1 }
 0x482   : > { %2037 = vmatmul.mubr.msk.f32.vlgmr.msra.gmra.mrb[4].mxu0 %vm470_vm2, %v877_v34 }
 0x483   : > { %2045 = vmatpush3.xpose.msk.msra.mxu0 %vm470_vm2, %v816_v33  ;;  %2046 = vmatprep.mubr.msk.f32.mxu0 %vm2182_vm0, %v2183_v6 }
 0x484   : > { %2096 = vmatprep.subr.bf16.mxu0 %v2181_v3 }
 0x486   : > { %2047 = vmatmul.mubr.msk.f32.vlgmr.msra.gmra.mrb[6].mxu0 %vm470_vm2, %v941_v35 }
 0x487   : > { %2057 = vmatprep.mubr.msk.f32.mxu0 %vm2182_vm0, %v2183_v6 }
 0x54b   : > { %v1029_v36 = vpop.f32.mrb[6].mxu1 }
 0x54c   : > { %v2033_v37 = vpop.f32.mrb[7].mxu1  ;;  %1261 = vxpose.xlu1.b32.start.end [1/1] (short) (narrow) %v1029_v36, 8 }
 0x54f   : > { %v1181_v38 = vpop.f32.mrb[8].mxu1 }
 0x550   : > { %v2043_v39 = vpop.f32.mrb[9].mxu1  ;;  %1325 = vxpose.xlu1.b32.start.end [1/1] (short) (narrow) %v1181_v38, 8 }
 0x555   : > { %v1105_v40 = vpop.f32.mrb[4].mxu0 }
 0x556   : > { %1293 = vxpose.xlu0.b32.start.end [1/1] (short) (narrow) %v1105_v40, 8  ;;  %v2038_v41 = vpop.f32.mrb[5].mxu0 }
 0x559   : > { %v1257_v42 = vpop.f32.mrb[6].mxu0 }
 0x55a   : > { %1357 = vxpose.xlu0.b32.start.end [1/1] (short) (narrow) %v1257_v42, 8  ;;  %v2048_v43 = vpop.f32.mrb[7].mxu0 }
 0x56e   : > { %2144 = vrot.lane.b32.xlu1 %v2143_v44, %s2190_s17 }
 0x583   : > { %2149 = vrot.lane.b32.xlu0 %v2148_v45, %s2190_s17 }
 0x587   : > { %1568 = vrot.lane.b32.xlu0 %v2283_v9, %s2190_s17 }
 0x5cc   : > { %v1277_v46 = vpop.trf.xlu1 }
 0x5d0   : > { %v1341_v53 = vpop.trf.xlu1 }
 0x5d1   : > { %v1389_v54 = vcombine.low %v1277_v46, %v1341_v53  ;;  %v1390_v55 = vcombine.high %v1277_v46, %v1341_v53  ;;  %v1952_v53 = vld [vmem:[%s2453_s4 + $0x1] ss:$0 sm:$0xff] }
 0x5d3   : > { %v1397_v58 = vrot.slane %v1389_v54, %v1396_v1  ;;  %v1404_v9 = vrot.slane %v1390_v55, %v1396_v1 }
 0x5d6   : > { %v1309_v52 = vpop.trf.xlu0 }
 0x5da   : > { %v1373_v56 = vpop.trf.xlu0 }
 0x5db   : > { %v1405_v2 = vcombine.low %v1309_v52, %v1373_v56  ;;  %v1406_v5 = vcombine.high %v1309_v52, %v1373_v56  ;;  %v1678_v56 = vld [vmem:[%s2451_s2 + $0x18] sm:$0xff] }
 0x5dd   : > { %v1413_v59 = vrot.slane %v1405_v2, %v1396_v1  ;;  %v1420_v60 = vrot.slane %v1406_v5, %v1396_v1  ;;  %v1679_v5 = vld [vmem:[%s2451_s2 + $0x28] sm:$0xff] }
 0x5df   : > { %v1421_v61 = vcombine.low %v1397_v58, %v1413_v59  ;;  %v1422_v62 = vcombine.high %v1397_v58, %v1413_v59  ;;  %v1437_v63 = vcombine.low %v1404_v9, %v1420_v60  ;;  %v1438_v4 = vcombine.high %v1404_v9, %v1420_v60  ;;  %v1756_v9 = vld [vmem:[%s2452_s3] sm:$0xff]  ;;  %v1757_v59 = vld [vmem:[%s2452_s3 + $0x8] sm:$0xff]  ;;  %v1758_v60 = vld [vmem:[%s2452_s3 + $0x10] sm:$0xff] }
 0x5e0   : > { %v2145_v7 = vpop.permute.xlu1 %2144 }
 0x5e1   : > { %v1429_v10 = vrot.slane %v1421_v61, %v1428_v57  ;;  %v1436_v11 = vrot.slane %v1422_v62, %v1428_v57  ;;  %v1445_v12 = vrot.slane %v1437_v63, %v1428_v57  ;;  %v1452_v13 = vrot.slane %v1438_v4, %v1428_v57  ;;  %v1759_v62 = vld [vmem:[%s2452_s3 + $0x18] sm:$0xff]  ;;  %v1760_v4 = vld [vmem:[%s2452_s3 + $0x20] sm:$0xff] }
 0x5e2   : > { %v2147_v14 = vunpack.i.h.bf16 %v2145_v7  ;;  %v2146_v15 = vunpack.i.l.bf16 %v2145_v7  ;;  %v2109_v61 = vpack.c.bf16 %v1757_v59, %v1756_v9  ;;  %v2112_v63 = vpack.c.bf16 %v1759_v62, %v1758_v60  ;;  %v1761_v7 = vld [vmem:[%s2452_s3 + $0x28] sm:$0xff] }
 0x5e3   : > { %v1457_v16 = vcombine.low %v1429_v10, %v1436_v11  ;;  %v1948_v17 = vcombine.high %v1429_v10, %v1436_v11  ;;  %v1473_v18 = vcombine.low %v1445_v12, %v1452_v13  ;;  %v1949_v19 = vcombine.high %v1445_v12, %v1452_v13 }
 0x5e4   : > { %v2097_v26 = vpack.c.bf16 %v2147_v14, %v2146_v15  ;;  %2110 = vmatpush3.bf16.msra.mxu1 %v2109_v61  ;;  %v2115_v10 = vpack.c.bf16 %v1761_v7, %v1760_v4 }
 0x5e5   : > { %v1464_v20 = vrot.slane %v1457_v16, %v1396_v1  ;;  %v1472_v21 = vrot.slane %v1948_v17, %v1396_v1  ;;  %v1480_v22 = vrot.slane %v1473_v18, %v1396_v1  ;;  %v1488_v23 = vrot.slane %v1949_v19, %v1396_v1  ;;  %2111 = vmatprep.subr.bf16.mxu1 %v2181_v3  ;;  %v1953_v17 = vld [vmem:[%s2453_s4 + $0x2] ss:$0 sm:$0xff] }
 0x5e6   : > { %2098 = vmatpush3.bf16.msra.mxu0 %v2097_v26  ;;  %v1762_v26 = vld [vmem:[%s2452_s3 + $0x30] sm:$0xff] }
 0x5e7   : > { %v1489_v24 = vcombine.low %v1464_v20, %v1472_v21  ;;  %v1505_v25 = vcombine.low %v1480_v22, %v1488_v23  ;;  %v1490_v27 = vcombine.high %v1464_v20, %v1472_v21  ;;  %v1506_v28 = vcombine.high %v1480_v22, %v1488_v23  ;;  %2099 = vmatprep.subr.bf16.mxu0 %v2181_v3 }
 0x5e8   : > { %2113 = vmatpush3.bf16.msra.mxu1 %v2112_v63 }
 0x5e9   : > { %v1497_v29 = vrot.slane %v1489_v24, %v1428_v57  ;;  %v1513_v30 = vrot.slane %v1505_v25, %v1428_v57  ;;  %v1504_v32 = vrot.slane %v1490_v27, %v1428_v57  ;;  %v1520_v33 = vrot.slane %v1506_v28, %v1428_v57  ;;  %v1680_v57 = vld [vmem:[%s2451_s2 + $0x38] sm:$0xff]  ;;  %2114 = vmatprep.subr.bf16.mxu1 %v2181_v3 }
 0x5ea   : > { %v2106_v58 = vpack.c.bf16 %v1680_v57, %v1679_v5 }
 0x5eb   : > { %v1522_v31 = vcombine.high %v1497_v29, %v1513_v30  ;;  %v1521_v34 = vcombine.low %v1497_v29, %v1513_v30  ;;  %v1523_v35 = vcombine.low %v1504_v32, %v1520_v33  ;;  %v1524_v36 = vcombine.high %v1504_v32, %v1520_v33 }
 0x5ec   : > { %2116 = vmatpush3.bf16.msra.mxu1 %v2115_v10 }
 0x5ed   : > { %1526 = vrot.lane.b32.xlu1 %v1522_v31, %s2193_s20  ;;  %2117 = vmatprep.subr.bf16.mxu1 %v2181_v3 }
 0x5f1   : > { %1530 = vrot.lane.b32.xlu1 %v1523_v35, %s2194_s21 }
 0x5f5   : > { %1534 = vrot.lane.b32.xlu1 %v1524_v36, %s2195_s22  ;;  %v2150_v37 = vpop.permute.xlu0 %2149 }
 0x5f6   : > { %v2152_v38 = vunpack.i.h.bf16 %v2150_v37  ;;  %v2151_v39 = vunpack.i.l.bf16 %v2150_v37 }
 0x5f8   : > { %v2100_v40 = vpack.c.bf16 %v2152_v38, %v2151_v39 }
 0x5f9   : > { %v1569_v47 = vpop.permute.xlu0 %1568 }
 0x5fa   : > { %2101 = vmatpush3.bf16.msra.mxu0 %v2100_v40 }
 0x5fb   : > { %2102 = vmatprep.subr.bf16.mxu0 %v2181_v3 }
 0x65f   : > { %v1527_v41 = vpop.permute.xlu1 %1526 }
 0x660   : > { %v1537_v43 = vsel %vm470_vm2, %v1521_v34, %v1527_v41 }
 0x663   : > { %v1531_v42 = vpop.permute.xlu1 %1530 }
 0x664   : > { %v1539_v44 = vsel %vm1538_vm4, %v1537_v43, %v1531_v42 }
 0x667   : > { %v1535_v45 = vpop.permute.xlu1 %1534 }
 0x668   : > { %v1541_v46 = vsel %vm1540_vm5, %v1539_v44, %v1535_v45 }
 0x669   : > { %2058 = vmatmul.mubr.msk.f32.vlgmr.msra.gmra.mrb[8].mxu0 %vm249_vm1, %v1541_v46 }
 0x66a   : > { %2068 = vmatprep.mubr.msk.f32.mxu0 %vm2182_vm0, %v2183_v6 }
 0x73c   : > { %v1640_v48 = vpop.f32.mrb[8].mxu0 }
 0x73d   : > { %v1641_v49 = vadd.f32 %v1640_v48, %v1569_v47  ;;  %v2059_v50 = vpop.f32.mrb[9].mxu0 }
 0x73f   : > { %v1644_v51 = vadd.f32 %v1641_v49, %v2273_v8  ;;  %v1677_v8 = vld [vmem:[%s2451_s2 + $0x8] sm:$0xff] }
 0x740   : > { %v2103_v2 = vpack.c.bf16 %v1678_v56, %v1677_v8 }
 0x741   : > { %v1647_v52 = vsel %vm249_vm1, %v1644_v51, 0.0 }
 0x742   : > { %1648 = vadd.xlane.f32.xlu1 %v1647_v52  ;;  %2104 = vmatpush3.bf16.msra.mxu0 %v2103_v2 }
 0x743   : > { %2105 = vmatprep.subr.bf16.mxu0 %v2181_v3  ;;  %v1763_v3 = vld [vmem:[%s2452_s3 + $0x38] sm:$0xff] }
 0x744   : > { %v2118_v20 = vpack.c.bf16 %v1763_v3, %v1762_v26 }
 0x746   : > { %2107 = vmatpush3.bf16.msra.mxu0 %v2106_v58  ;;  %2119 = vmatpush3.bf16.msra.mxu1 %v2118_v20 }
 0x753   : > { %1764 = vrot.lane.b32.xlu1 %v1952_v53, %s2189_s16 }
 0x7cf   : > { %v1649_v0 = vpop.xlane.xlu1 %1648 }
 0x7d0   : > { %v1651_v1 = vmul.f32 0.03125, %v1649_v0 }
 0x7d2   : > { %v1652_v54 = vsub.f32 %v1644_v51, %v1651_v1 }
 0x7d3   : > { %v1765_v25 = vpop.permute.xlu1 %1764 }
 0x7d4   : > { %v1653_v55 = vmul.f32 %v1652_v54, %v1652_v54 }
 0x7d6   : > { %v1654_v6 = vsel %vm249_vm1, %v1653_v55, 0.0 }
 0x7d7   : > { %1655 = vadd.xlane.f32.xlu0 %v1654_v6 }
 0x7ed   : > { %1666 = vrot.lane.b32.xlu0 %v1952_v53, %s2190_s17 }
 0x864   : > { %v1656_v11 = vpop.xlane.xlu0 %1655 }
 0x865   : > { %v1657_v12 = vmul.f32 0.03125, %v1656_v11 }
 0x867   : > { %v1658_v13 = vadd.f32 1e-05, %v1657_v12 }
 0x868   : > { %v1667_v15 = vpop.permute.xlu0 %1666 }
 0x869   : > { %2169 = vrsqrt.f32 %v1658_v13 }
 0x873   : > { %v2170_v14 = vpop.eup %2169 }
 0x874   : > { %v1660_v16 = vmul.f32 %v2170_v14, %v1652_v54 }
 0x876   : > { %v1669_v18 = vmul.f32 %v1667_v15, %v1660_v16 }
 0x878   : > { %v1676_v19 = vadd.f32 %v1953_v17, %v1669_v18 }
 0x87a   : > { %2069 = vmatmul.mubr.msk.f32.vlgmr.msra.gmra.mrb[10].mxu0 %vm249_vm1, %v1676_v19 }
 0x94d   : > { %v1751_v21 = vpop.f32.mrb[10].mxu0 }
 0x94e   : > { %v1752_v22 = vadd.f32 %v1952_v53, %v1751_v21  ;;  %v2070_v23 = vpop.f32.mrb[11].mxu0 }
 0x950   : > { %v1755_v24 = vmax.f32 %v1752_v22, 0.0 }
 0x952   : > { %2088 = vmatmul.mubr.msk.f32.vlgmr.msra.gmra.mrb[10].mxu1 %vm1767_vm6, %v1755_v24 }
 0xa25   : > { %v1837_v27 = vpop.f32.mrb[10].mxu1 }
 0xa26   : > { %v1838_v28 = vadd.f32 %v1837_v27, %v1765_v25  ;;  %v2089_v29 = vpop.f32.mrb[11].mxu1 }
 0xa28   : > { %v1841_v30 = vadd.f32 %v1838_v28, %v1676_v19 }
 0xa2a   : > { %v1842_v31 = vsel %vm249_vm1, %v1841_v30, 0.0 }
 0xa2b   : > { %1843 = vadd.xlane.f32.xlu1 %v1842_v31 }
 0xa3c   : > { %1859 = vrot.lane.b32.xlu1 %v1953_v17, %s2189_s16 }
 0xab8   : > { %v1844_v32 = vpop.xlane.xlu1 %1843 }
 0xab9   : > { %v1845_v33 = vmul.f32 0.03125, %v1844_v32 }
 0xabb   : > { %v1846_v34 = vsub.f32 %v1841_v30, %v1845_v33 }
 0xabc   : > { %v1860_v43 = vpop.permute.xlu1 %1859 }
 0xabd   : > { %v1847_v35 = vmul.f32 %v1846_v34, %v1846_v34 }
 0xabf   : > { %v1848_v36 = vsel %vm249_vm1, %v1847_v35, 0.0 }
 0xac0   : > { %1849 = vadd.xlane.f32.xlu0 %v1848_v36 }
 0xad6   : > { %1855 = vrot.lane.b32.xlu0 %v1953_v17, %s2186_s11 }
 0xb4d   : > { %v1850_v37 = vpop.xlane.xlu0 %1849 }
 0xb4e   : > { %v1851_v38 = vmul.f32 0.03125, %v1850_v37 }
 0xb50   : > { %v1852_v39 = vadd.f32 1e-05, %v1851_v38 }
 0xb51   : > { %v1856_v41 = vpop.permute.xlu0 %1855 }
 0xb52   : > { %2171 = vrsqrt.f32 %v1852_v39 }
 0xb5c   : > { %v2172_v40 = vpop.eup %2171 }
 0xb5d   : > { %v1854_v42 = vmul.f32 %v2172_v40, %v1846_v34 }
 0xb5f   : > { %v1858_v44 = vmul.f32 %v1856_v41, %v1854_v42 }
 0xb61   : > { %v1862_v45 = vadd.f32 %v1860_v43, %v1858_v44 }
 0xb63   : > { %v1863_v46 = vsel %vm249_vm1, %v1862_v45, 0.0 }
 0xb64   : > { %1864 = vst [vmem:[%s233_s8] sm:$0xff] %v1863_v46 }
 0xb65 PF: > { %s15_s18 = sadd.s32 1, %s2179_s18  }
 0xb66   : > { %p12_p4 = scmp.ge.s32.totalorder %s15_s18, 4  }
 0xb68   :  { %14 = sbr.rel (!%p12_p4) target bundleno = 1 (0x1), region = 73 }

// kernel: transformer_forward.3
= control target key start
LH: loop header
LB: loop body
LE: loop exit
PB: predicated region body
PF: predicated region fallthrough
CT: control target
= control target key end

     0   :  { %s5180_s0 = inlined_call_operand.vmem [shape: f32[2,8,32], index: 0, kind: input, shape index: {}]   ;;  %s5181_s1 = inlined_call_operand.vmem [shape: f32[2,8,128], index: 1, kind: input, shape index: {}]   ;;  %s5182_s2 = inlined_call_operand.vmem [shape: f32[2,1,8], index: 2, kind: input, shape index: {}]   ;;  %s5183_s3 = inlined_call_operand.vmem [shape: f32[2,1,8], index: 3, kind: input, shape index: {}]   ;;  %s5184_s4 = inlined_call_operand.vmem [shape: f32[32,448], index: 4, kind: input, shape index: {}]   ;;  %s5185_s5 = inlined_call_operand.vmem [shape: f32[64,32], index: 5, kind: input, shape index: {}]   ;;  %s5186_s6 = inlined_call_operand.vmem [shape: f32[1,672], index: 6, kind: input, shape index: {}]   ;;  %s5187_s7 = inlined_call_operand.hbm [shape: f32[2,8,128], index: 7, kind: output, shape index: {0}]   ;;  %s5188_s8 = inlined_call_operand.vmem [shape: f32[2,8,128], index: 8, kind: output, shape index: {1}]  }
   0x1   :  { %5203 = sst [smem:[#allocation5_spill]] %s5180_s0 }
   0x2   :  { %5204 = sst [smem:[#allocation6_spill]] %s5181_s1 }
   0x3   :  { %14 = vsyncpa [#allocation3], 0 }
   0x4   :  { %16 = vsyncpa [#allocation3 + $0x1], 0  ;;  %s4577_s27 = smov 0   ;;  %s4579_s28 = smov 0  }
   0x5   :  { %s4581_s29 = smov 0   ;;  %s4583_s30 = smov 0  }
   0x6 LB: > { %s4598_s9 = sadd.s32 4294967295, %s4513_s30   ;;  %s3943_s10 = sadd.s32 4294967294, %s4513_s30   ;;  %s4513_s30 = sphi %s4583_s30, %s5219_s30   ;;  %s4509_s29 = sphi %s4581_s29, %s5218_s29   ;;  %s4505_s28 = sphi %s4579_s28, %s5217_s28   ;;  %s4501_s27 = sphi %s4577_s27, %s5216_s27  }
   0x7   : > { %s4602_s11 = sadd.s32 1, %s4513_s30   ;;  %s196_s12 = sadd.s32 1, %s4509_s29 }
   0x8   : > { %s193_s13 = ssub.s32 %s4513_s30, %s4602_s11  ;;  %p206_p0 = scmp.ne.s32.totalorder %s4509_s29, %s4505_s28 }
   0x9   : > { %p194_p1 = scmp.eq.s32.totalorder %s193_s13, 0  ;;  %p207_p2 = scmp.eq.s32.totalorder %s4598_s9, 1 }
   0xa   : > { %p212_p3 = scmp.ne.s32.totalorder %s4505_s28, %s4501_s27  ;;  %p213_p4 = scmp.eq.s32.totalorder %s3943_s10, 1 }
   0xb   : > { %s4613_s14 = scalar_select %p194_p1, %s4509_s29, %s196_s12  }
   0xc   : > { %p4615_p5 = por %p207_p2, %p206_p0  ;;  %p4619_p6 = por %p213_p4, %p212_p3 }
   0xd   : > { %p3946_p7 = scmp.ge.s32.totalorder %s4513_s30, 1  ;;  %p292_p8 = scmp.lt.s32.totalorder %s4513_s30, 3 }
   0xf   : > { %p293_p9 = pnand %p3946_p7, %p292_p8 }
  0x10   : > { %v4628_v0 = vld [vmem:[%s5184_s4] sm:$0xff] (!%p293_p9)  ;;  %v4515_v3 = vmov (!%p293_p9), 0.0|0.0   ;;  %vm4516_vm0 = vmmov (!%p293_p9), 0   ;;  %v4517_v6 = vmov (!%p293_p9), 0.0   ;;  %p339_p10 = scmp.lt.s32.totalorder (!%p293_p9), %s4598_s9, 1  ;;  %s5207_s0 = sld [smem:[#allocation5_spill]] (!%p293_p9)  ;;  %v361_v24 = vlaneseq (!%p293_p9) }
  0x11   : > { %296 = sbr.rel (%p293_p9) target bundleno = 5119 (0x13ff), region = 48  ;;  %v4633_v1 = vld [vmem:[%s5184_s4 + $0x20] sm:$0xff] (!%p293_p9)  ;;  %4254 = vmatprep.subr.bf16.mxu0 (!%p293_p9), %v4515_v3  ;;  %4086 = vmatprep.mubr.msk.f32.mxu0 (!%p293_p9), %vm4516_vm0, %v4517_v6  ;;  %vm388_vm1 = vcmask (!%p293_p9), 261120   ;;  %s5197_s19 = smov (!%p293_p9), 104   ;;  %vm609_vm2 = vcmask (!%p293_p9), 64512   ;;  %v4522_v28 = vmov (!%p293_p9), 0  }
  0x12   : > { %v4638_v2 = vld [vmem:[%s5184_s4 + $0x40] sm:$0xff] (!%p293_p9)  ;;  %v4255_v4 = vpack.c.bf16 (!%p293_p9), %v4633_v1, %v4628_v0  ;;  %4094 = vmatprep.subr.mxu1 (!%p293_p9), %v4517_v6  ;;  %4096 = vmatprep.mubr.msk.f32.mxu1 (!%p293_p9), %vm4516_vm0, %v4517_v6  ;;  %s4519_s20 = smov (!%p293_p9), 120   ;;  %s4520_s21 = smov (!%p293_p9), 96   ;;  %v4726_v26 = vshrl.u32 (!%p293_p9), %v361_v24, 7  ;;  %v364_v30 = vand.u32 (!%p293_p9), 127, %v361_v24  ;;  %vm1671_vm7 = vcmask (!%p293_p9), 130048  }
  0x13   : > { %v4646_v5 = vld [vmem:[%s5184_s4 + $0x60] sm:$0xff] (!%p293_p9)  ;;  %s5199_s22 = smov (!%p293_p9), 112   ;;  %v4523_v33 = vmov (!%p293_p9), -1e+09   ;;  %s5189_s12 = smov (!%p293_p9), 64   ;;  %vm1673_vm8 = vcmask (!%p293_p9), 195584  }
  0x14   : > { %4256 = vmatpush3.bf16.msra.mxu0 (!%p293_p9), %v4255_v4  ;;  %v4258_v7 = vpack.c.bf16 (!%p293_p9), %v4646_v5, %v4638_v2  ;;  %v4677_v9 = vld [vmem:[%s5186_s6] ss:$0 sm:$0xff] (!%p293_p9)  ;;  %v4729_v27 = vsub.s32 (!%p293_p9), 0, %v4726_v26  ;;  %vm365_vm4 = vcmp.ge.s32.totalorder (!%p293_p9), %v4726_v26, %v364_v30  ;;  %s5195_s17 = smov (!%p293_p9), 8   ;;  %s5193_s18 = smov (!%p293_p9), 16   ;;  %vm3426_vm10 = vcmask (!%p293_p9), 523264  }
  0x15   : > { %4257 = vmatprep.subr.bf16.mxu0 (!%p293_p9), %v4515_v3  ;;  %s5191_s23 = smov (!%p293_p9), 24   ;;  %s5208_s1 = sld [smem:[#allocation6_spill]] (!%p293_p9) }
  0x16   : > { %s5213_s24 = smov (!%p293_p9), 24  }
  0x18   : > { %s4657_s25 = scalar_select %p339_p10, %s4598_s9, 1  ;;  %4259 = vmatpush3.bf16.msra.mxu0 %v4258_v7 }
  0x19   : > { %4089 = vmatprep.subr.mxu0 %v4517_v6 }
  0x1a   : > { %s4661_s26 = sshll.u32 %s4657_s25, 3  ;;  %s349_s10 = scalar_lea.vmem %s5182_s2, %s4657_s25 }
  0x1b   : > { %s342_s13 = scalar_lea.vmem %s5207_s0, %s4661_s26  ;;  %v359_v25 = vld [vmem:[%s349_s10] sm:$0x1]  ;;  %s5209_s10 = smov 112  }
  0x1c   : > { %v4667_v8 = vld [vmem:[%s342_s13] sm:$0xff]  ;;  %vm366_vm3 = vcmp.gt.f32.partialorder %v359_v25, 0.5  ;;  %s5201_s13 = smov 32  }
  0x1d   : > { %4087 = vmatmul.mubr.msk.f32.vlgmr.msra.gmra.mrb[0].mxu0 %vm388_vm1, %v4667_v8  ;;  %v367_v29 = vsel %vm366_vm3, 1, %v4522_v28 }
  0x1e   : > { %4091 = vmatprep.mubr.msk.f32.mxu0 %vm4516_vm0, %v4517_v6  ;;  %v371_v31 = vrot.slane %v367_v29, %v4729_v27 }
  0x20   : > { %vm372_vm5 = vcmp.eq.s32.totalorder %v371_v31, 1 }
  0x21   : > { %vm373_vm6 = vmand %vm365_vm4, %vm372_vm5 }
  0x22   : > { %v374_v34 = vsel %vm373_vm6, 0.0, %v4523_v33 }
  0xf0   : > { %v458_v10 = vpop.f32.mrb[0].mxu0 }
  0xf1   : > { %v4680_v11 = vadd.f32 %v4677_v9, %v458_v10  ;;  %v4088_v12 = vpop.f32.mrb[1].mxu0 }
  0xf3   : > { %467 = vrot.lane.b32.xlu1 %v4680_v11, %s5197_s19  ;;  %463 = vrot.lane.b32.xlu0 %v4680_v11, %s4519_s20  ;;  %s5210_s19 = smov 104  }
  0xf7   : > { %469 = vrot.lane.b32.xlu1 %v4680_v11, %s4520_s21  ;;  %465 = vrot.lane.b32.xlu0 %v4680_v11, %s5199_s22  ;;  %s330_s22 = sand.u32 1, %s4505_s28  }
  0xf8   : > { %s3947_s0 = sshll.u32 %s330_s22, 3 }
 0x165   : > { %v4690_v13 = vpop.permute.xlu0 %463  ;;  %v4694_v14 = vpop.permute.xlu1 %467 }
 0x166   : > { %471 = vrot.lane.b32.xlu0 %v4690_v13, %s4520_s21 }
 0x169   : > { %v4696_v15 = vpop.permute.xlu0 %465  ;;  %v470_v16 = vpop.permute.xlu1 %469 }
 0x16a   : > { %475 = vrot.lane.b32.xlu0 %v4694_v14, %s4520_s21  ;;  %473 = vrot.lane.b32.xlu1 %v4696_v15, %s4520_s21 }
 0x193   : > { %481 = vxpose.xlu1.b32.start.end [1/1] (short) (narrow) %v470_v16, 8 }
 0x1d8   : > { %v472_v17 = vpop.permute.xlu0 %471 }
 0x1d9   : > { %513 = vxpose.xlu0.b32.start.end [1/1] (short) (narrow) %v472_v17, 8 }
 0x1dc   : > { %v474_v18 = vpop.permute.xlu1 %473  ;;  %v476_v19 = vpop.permute.xlu0 %475 }
 0x1dd   : > { %545 = vxpose.xlu0.b32.start.end [1/1] (short) (narrow) %v474_v18, 8 }
 0x1e1   : > { %577 = vxpose.xlu0.b32.start.end [1/1] (short) (narrow) %v476_v19, 8 }
 0x213   : > { %v497_v20 = vpop.trf.xlu1 }
 0x214   : > { %4090 = vmatpush3.msra.mxu0 %v497_v20 }
 0x215   : > { %4092 = vmatmul.mubr.msk.f32.vlgmr.msra.gmra.mrb[2].mxu0 %vm609_vm2, %v4680_v11  ;;  %4104 = vmatprep.subr.mxu0 %v4517_v6 }
 0x216   : > { %4106 = vmatprep.mubr.msk.f32.mxu0 %vm4516_vm0, %v4517_v6 }
 0x259   : > { %v529_v21 = vpop.trf.xlu0 }
 0x25a   : > { %4095 = vmatpush3.msra.mxu1 %v529_v21 }
 0x25b   : > { %4097 = vmatmul.mubr.msk.f32.vlgmr.msra.gmra.mrb[0].mxu1 %vm609_vm2, %v4690_v13  ;;  %4099 = vmatprep.subr.mxu1 %v4517_v6 }
 0x25c   : > { %4101 = vmatprep.mubr.msk.f32.mxu1 %vm4516_vm0, %v4517_v6 }
 0x25d   : > { %v561_v22 = vpop.trf.xlu0 }
 0x25e   : > { %4100 = vmatpush3.msra.mxu1 %v561_v22 }
 0x25f   : > { %4102 = vmatmul.mubr.msk.f32.vlgmr.msra.gmra.mrb[2].mxu1 %vm609_vm2, %v4696_v15  ;;  %4109 = vmatprep.subr.mxu1 %v4517_v6 }
 0x260   : > { %4111 = vmatprep.mubr.msk.f32.mxu1 %vm4516_vm0, %v4517_v6 }
 0x261   : > { %v593_v23 = vpop.trf.xlu0 }
 0x262   : > { %4105 = vmatpush3.msra.mxu0 %v593_v23 }
 0x263   : > { %4107 = vmatmul.mubr.msk.f32.vlgmr.msra.gmra.mrb[4].mxu0 %vm609_vm2, %v4694_v14  ;;  %4114 = vmatprep.subr.mxu0 %v4517_v6 }
 0x264   : > { %4116 = vmatprep.mubr.msk.f32.mxu0 %vm4516_vm0, %v4517_v6 }
 0x2e8   : > { %v678_v32 = vpop.f32.mrb[2].mxu0 }
 0x2e9   : > { %v898_v35 = vmul.f32 0.35355338, %v678_v32  ;;  %v4093_v36 = vpop.f32.mrb[3].mxu0 }
 0x2eb   : > { %v902_v37 = vadd.f32 %v898_v35, %v374_v34 }
 0x2ed   : > { %v906_v38 = vsel %vm609_vm2, %v902_v37, -inf }
 0x2ee   : > { %907 = vmax.xlane.f32.xlu1 %v906_v38 }
 0x32e   : > { %v750_v39 = vpop.f32.mrb[0].mxu1 }
 0x32f   : > { %v899_v40 = vmul.f32 0.35355338, %v750_v39  ;;  %v4098_v41 = vpop.f32.mrb[1].mxu1 }
 0x331   : > { %v903_v42 = vadd.f32 %v899_v40, %v374_v34 }
 0x332   : > { %v822_v43 = vpop.f32.mrb[2].mxu1 }
 0x333   : > { %v900_v44 = vmul.f32 0.35355338, %v822_v43  ;;  %v4103_v45 = vpop.f32.mrb[3].mxu1  ;;  %v909_v46 = vsel %vm609_vm2, %v903_v42, -inf }
 0x334   : > { %910 = vmax.xlane.f32.xlu0 %v909_v46 }
 0x335   : > { %v904_v47 = vadd.f32 %v900_v44, %v374_v34 }
 0x336   : > { %v894_v48 = vpop.f32.mrb[4].mxu0 }
 0x337   : > { %v901_v49 = vmul.f32 0.35355338, %v894_v48  ;;  %v4108_v50 = vpop.f32.mrb[5].mxu0  ;;  %v912_v51 = vsel %vm609_vm2, %v904_v47, -inf }
 0x338   : > { %913 = vmax.xlane.f32.xlu1 %v912_v51  ;;  %v4368_v50 = vpack.i.bf16 %v4646_v5, %v4638_v2 }
 0x339   : > { %v905_v52 = vadd.f32 %v901_v49, %v374_v34  ;;  %v4363_v49 = vpack.i.bf16 %v4633_v1, %v4628_v0 }
 0x33b   : > { %v915_v53 = vsel %vm609_vm2, %v905_v52, -inf }
 0x33c   : > { %916 = vmax.xlane.f32.xlu1 %v915_v53 }
 0x34a   : > { %950 = vrot.lane.b32.xlu0 %v4680_v11, %s5189_s12 }
 0x34d   : > { %952 = vrot.lane.b32.xlu1 %v4690_v13, %s5189_s12 }
 0x34e   : > { %956 = vrot.lane.b32.xlu0 %v4694_v14, %s5189_s12 }
 0x351   : > { %954 = vrot.lane.b32.xlu1 %v4696_v15, %s5189_s12  ;;  %s346_s12 = scalar_lea.vmem %s5208_s1, %s4661_s26  ;;  %s332_s1 = scalar_lea.vmem [#allocation2], %s3947_s0 }
 0x37b   : > { %v908_v54 = vpop.xlane.xlu1 %907 }
 0x37c   : > { %v918_v55 = vsub.f32 %v902_v37, %v908_v54  ;;  %v4527_v54 = vmov 1934713408  }
 0x37e   : > { %v922_v56 = vmul.f32 1.442695, %v918_v55  ;;  %v1557_v55 = vunpack.c.l.s4 %v4527_v54 }
 0x380   : > { %4413 = vpow2.f32 %v922_v56  ;;  %v1558_v0 = vunpack.c.0.s8 %v1557_v55  ;;  %v1810_v55 = vld [vmem:[%s5184_s4 + $0x8] sm:$0xff] }
 0x38a   : > { %v4414_v57 = vpop.eup %4413 }
 0x38b   : > { %v930_v58 = vsel %vm609_vm2, %v4414_v57, 0.0 }
 0x38c   : > { %931 = vadd.xlane.f32.xlu1 %v930_v58 }
 0x3c1   : > { %v911_v59 = vpop.xlane.xlu0 %910 }
 0x3c2   : > { %v919_v60 = vsub.f32 %v903_v42, %v911_v59 }
 0x3c4   : > { %v924_v61 = vmul.f32 1.442695, %v919_v60 }
 0x3c5   : > { %v914_v62 = vpop.xlane.xlu1 %913  ;;  %v951_v19 = vpop.permute.xlu0 %950 }
 0x3c6   : > { %4415 = vpow2.f32 %v924_v61  ;;  %v920_v63 = vsub.f32 %v904_v47, %v914_v62  ;;  %v4782_v62 = vsub.s32 %v1558_v0, %v4726_v26 }
 0x3c8   : > { %v926_v4 = vmul.f32 1.442695, %v920_v63 }
 0x3c9   : > { %v917_v7 = vpop.xlane.xlu1 %916  ;;  %v957_v21 = vpop.permute.xlu0 %956 }
 0x3ca   : > { %4417 = vpow2.f32 %v926_v4  ;;  %v921_v10 = vsub.f32 %v905_v52, %v917_v7  ;;  %v4526_v52 = vmov 1983009808  }
 0x3cb   : > { %v1525_v53 = vunpack.c.l.s4 %v4526_v52 }
 0x3cc   : > { %v928_v11 = vmul.f32 1.442695, %v921_v10 }
 0x3cd   : > { %v953_v18 = vpop.permute.xlu1 %952  ;;  %v1526_v56 = vunpack.c.0.s8 %v1525_v53 }
 0x3ce   : > { %4419 = vpow2.f32 %v928_v11 }
 0x3cf   : > { %v4779_v1 = vsub.s32 %v1526_v56, %v4726_v26  ;;  %v1811_v56 = vld [vmem:[%s5184_s4 + $0x28] sm:$0xff] }
 0x3d0   : > { %v4416_v12 = vpop.eup %4415  ;;  %v4267_v0 = vpack.c.bf16 %v1811_v56, %v1810_v55 }
 0x3d1   : > { %v933_v13 = vsel %vm609_vm2, %v4416_v12, 0.0  ;;  %v955_v20 = vpop.permute.xlu1 %954 }
 0x3d2   : > { %934 = vadd.xlane.f32.xlu0 %v933_v13 }
 0x3d4   : > { %v4418_v14 = vpop.eup %4417 }
 0x3d5   : > { %v936_v15 = vsel %vm609_vm2, %v4418_v14, 0.0 }
 0x3d6   : > { %937 = vadd.xlane.f32.xlu0 %v936_v15 }
 0x3d8   : > { %v4420_v16 = vpop.eup %4419 }
 0x3d9   : > { %v939_v17 = vsel %vm609_vm2, %v4420_v16, 0.0 }
 0x3da   : > { %940 = vadd.xlane.f32.xlu1 %v939_v17 }
 0x403   : > { %962 = vxpose.xlu0.b32.start.end [1/1] (short) (narrow) %v951_v19, 8 }
 0x407   : > { %1026 = vxpose.xlu0.b32.start.end [1/1] (short) (narrow) %v955_v20, 8 }
 0x40b   : > { %1058 = vxpose.xlu0.b32.start.end [1/1] (short) (narrow) %v957_v21, 8 }
 0x40d   : > { %994 = vxpose.xlu1.b32.start.end [1/1] (short) (narrow) %v953_v18, 8 }
 0x419   : > { %v932_v22 = vpop.xlane.xlu1 %931 }
 0x41a   : > { %4421 = vrcp.f32 %v932_v22 }
 0x424   : > { %v4422_v23 = vpop.eup %4421 }
 0x425   : > { %v946_v24 = vmul.f32 %v4422_v23, %v4414_v57 }
 0x427   : > { %4110 = vmatpush3.xpose.msk.msra.mxu1 %vm609_vm2, %v946_v24 }
 0x428   : > { %4119 = vmatprep.subr.mxu1 %v4517_v6 }
 0x45f   : > { %v935_v25 = vpop.xlane.xlu0 %934 }
 0x460   : > { %4423 = vrcp.f32 %v935_v25 }
 0x463   : > { %v938_v30 = vpop.xlane.xlu0 %937 }
 0x464   : > { %4425 = vrcp.f32 %v938_v30 }
 0x467   : > { %v941_v31 = vpop.xlane.xlu1 %940 }
 0x468   : > { %4427 = vrcp.f32 %v941_v31 }
 0x46a   : > { %v4424_v28 = vpop.eup %4423 }
 0x46b   : > { %v947_v29 = vmul.f32 %v4424_v28, %v4416_v12 }
 0x46d   : > { %4115 = vmatpush3.xpose.msk.msra.mxu0 %vm609_vm2, %v947_v29 }
 0x46e   : > { %4124 = vmatprep.subr.mxu0 %v4517_v6  ;;  %v4426_v32 = vpop.eup %4425 }
 0x46f   : > { %v948_v34 = vmul.f32 %v4426_v32, %v4418_v14 }
 0x472   : > { %v4428_v37 = vpop.eup %4427 }
 0x473   : > { %v949_v38 = vmul.f32 %v4428_v37, %v4420_v16 }
 0x483   : > { %v978_v35 = vpop.trf.xlu0 }
 0x484   : > { %4112 = vmatmul.mubr.msk.f32.vlgmr.msra.gmra.mrb[4].mxu1 %vm609_vm2, %v978_v35 }
 0x485   : > { %4120 = vmatpush3.xpose.msk.msra.mxu1 %vm609_vm2, %v948_v34  ;;  %4121 = vmatprep.mubr.msk.f32.mxu1 %vm4516_vm0, %v4517_v6 }
 0x486   : > { %4260 = vmatprep.subr.bf16.mxu1 %v4515_v3 }
 0x487   : > { %v1042_v36 = vpop.trf.xlu0 }
 0x488   : > { %4122 = vmatmul.mubr.msk.f32.vlgmr.msra.gmra.mrb[6].mxu1 %vm609_vm2, %v1042_v36 }
 0x489   : > { %4137 = vmatprep.mubr.msk.f32.mxu1 %vm4516_vm0, %v4517_v6 }
 0x48b   : > { %v1074_v40 = vpop.trf.xlu0 }
 0x48d   : > { %v1010_v39 = vpop.trf.xlu1 }
 0x48e   : > { %4117 = vmatmul.mubr.msk.f32.vlgmr.msra.gmra.mrb[6].mxu0 %vm609_vm2, %v1010_v39 }
 0x48f   : > { %4125 = vmatpush3.xpose.msk.msra.mxu0 %vm609_vm2, %v949_v38  ;;  %4126 = vmatprep.mubr.msk.f32.mxu0 %vm4516_vm0, %v4517_v6 }
 0x490   : > { %4266 = vmatprep.subr.bf16.mxu0 %v4515_v3 }
 0x492   : > { %4127 = vmatmul.mubr.msk.f32.vlgmr.msra.gmra.mrb[8].mxu0 %vm609_vm2, %v1074_v40 }
 0x493   : > { %4148 = vmatprep.mubr.msk.f32.mxu0 %vm4516_vm0, %v4517_v6  ;;  %4268 = vmatpush3.bf16.msra.mxu0 %v4267_v0 }
 0x494   : > { %4269 = vmatprep.subr.bf16.mxu0 %v4515_v3 }
 0x557   : > { %v1162_v41 = vpop.f32.mrb[4].mxu1 }
 0x558   : > { %v4113_v42 = vpop.f32.mrb[5].mxu1  ;;  %1394 = vxpose.xlu1.b32.start.end [1/1] (short) (narrow) %v1162_v41, 8 }
 0x55b   : > { %v1314_v43 = vpop.f32.mrb[6].mxu1 }
 0x55c   : > { %v4123_v44 = vpop.f32.mrb[7].mxu1  ;;  %1458 = vxpose.xlu1.b32.start.end [1/1] (short) (narrow) %v1314_v43, 8 }
 0x561   : > { %v1238_v45 = vpop.f32.mrb[6].mxu0 }
 0x562   : > { %1426 = vxpose.xlu0.b32.start.end [1/1] (short) (narrow) %v1238_v45, 8  ;;  %v4118_v46 = vpop.f32.mrb[7].mxu0 }
 0x565   : > { %v1390_v47 = vpop.f32.mrb[8].mxu0 }
 0x566   : > { %1490 = vxpose.xlu0.b32.start.end [1/1] (short) (narrow) %v1390_v47, 8  ;;  %v4128_v48 = vpop.f32.mrb[9].mxu0 }
 0x57a   : > { %4364 = vrot.lane.b32.xlu1 %v4363_v49, %s5201_s13 }
 0x58f   : > { %4369 = vrot.lane.b32.xlu0 %v4368_v50, %s5201_s13 }
 0x593   : > { %1701 = vrot.lane.b32.xlu0 %v4677_v9, %s5201_s13 }
 0x5d8   : > { %v1410_v51 = vpop.trf.xlu1 }
 0x5dc   : > { %v1474_v57 = vpop.trf.xlu1 }
 0x5dd   : > { %v1522_v59 = vcombine.low %v1410_v51, %v1474_v57  ;;  %v1523_v60 = vcombine.high %v1410_v51, %v1474_v57  ;;  %v1812_v57 = vld [vmem:[%s5184_s4 + $0x48] sm:$0xff] }
 0x5df   : > { %v1530_v9 = vrot.slane %v1522_v59, %v4779_v1  ;;  %v1537_v63 = vrot.slane %v1523_v60, %v4779_v1  ;;  %v1813_v59 = vld [vmem:[%s5184_s4 + $0x68] sm:$0xff] }
 0x5e0   : > { %v4827_v60 = vpack.i.bf16 %v1813_v59, %v1812_v57 }
 0x5e2   : > { %v1442_v58 = vpop.trf.xlu0 }
 0x5e6   : > { %v1506_v2 = vpop.trf.xlu0 }
 0x5e7   : > { %v1538_v5 = vcombine.low %v1442_v58, %v1506_v2  ;;  %v1539_v61 = vcombine.high %v1442_v58, %v1506_v2  ;;  %v4820_v58 = vpack.i.bf16 %v1811_v56, %v1810_v55  ;;  %v4270_v2 = vpack.c.bf16 %v1813_v59, %v1812_v57 }
 0x5e9   : > { %v1546_v4 = vrot.slane %v1538_v5, %v4779_v1  ;;  %v1553_v7 = vrot.slane %v1539_v61, %v4779_v1  ;;  %4374 = vrot.lane.b32.xlu0 %v4820_v58, %s4520_s21  ;;  %4271 = vmatpush3.bf16.msra.mxu0 %v4270_v2 }
 0x5ea   : > { %4162 = vmatprep.subr.mxu0 %v4517_v6 }
 0x5eb   : > { %v1554_v10 = vcombine.low %v1530_v9, %v1546_v4  ;;  %v1555_v11 = vcombine.high %v1530_v9, %v1546_v4  ;;  %v1570_v12 = vcombine.low %v1537_v63, %v1553_v7  ;;  %v1571_v13 = vcombine.high %v1537_v63, %v1553_v7 }
 0x5ec   : > { %v4365_v14 = vpop.permute.xlu1 %4364 }
 0x5ed   : > { %v1562_v15 = vrot.slane %v1554_v10, %v4782_v62  ;;  %v1569_v16 = vrot.slane %v1555_v11, %v4782_v62  ;;  %v1578_v17 = vrot.slane %v1570_v12, %v4782_v62  ;;  %v1585_v18 = vrot.slane %v1571_v13, %v4782_v62  ;;  %4379 = vrot.lane.b32.xlu0 %v4827_v60, %s4520_s21 }
 0x5ee   : > { %v4367_v19 = vunpack.i.h.bf16 %v4365_v14  ;;  %v4366_v20 = vunpack.i.l.bf16 %v4365_v14 }
 0x5ef   : > { %v1590_v21 = vcombine.low %v1562_v15, %v1569_v16  ;;  %v3965_v22 = vcombine.high %v1562_v15, %v1569_v16  ;;  %v1606_v23 = vcombine.low %v1578_v17, %v1585_v18  ;;  %v3966_v24 = vcombine.high %v1578_v17, %v1585_v18  ;;  %v3969_v18 = vld [vmem:[%s5186_s6 + $0x3] ss:$0 sm:$0xff] }
 0x5f0   : > { %v4261_v25 = vpack.c.bf16 %v4367_v19, %v4366_v20  ;;  %v358_v19 = vld [vmem:[%s346_s12] sm:$0xff]  ;;  %s3827_s12 = sshll.u32 %s332_s1, 4  ;;  %s5140_s12 = int_to_ptr.vmem [resolvable:$true] %s3827_s12 }
 0x5f1   : > { %v1597_v28 = vrot.slane %v1590_v21, %v4779_v1  ;;  %v1605_v29 = vrot.slane %v3965_v22, %v4779_v1  ;;  %v1613_v30 = vrot.slane %v1606_v23, %v4779_v1  ;;  %v1621_v31 = vrot.slane %v3966_v24, %v4779_v1  ;;  %v4852_v24 = vld [vmem:[%s5186_s6 + $0x1] ss:$0 sm:$0xff] }
 0x5f2   : > { %4262 = vmatpush3.bf16.msra.mxu1 %v4261_v25 }
 0x5f3   : > { %v1622_v32 = vcombine.low %v1597_v28, %v1605_v29  ;;  %v1638_v34 = vcombine.low %v1613_v30, %v1621_v31  ;;  %v1623_v35 = vcombine.high %v1597_v28, %v1605_v29  ;;  %v1639_v36 = vcombine.high %v1613_v30, %v1621_v31  ;;  %4263 = vmatprep.subr.bf16.mxu1 %v4515_v3 }
 0x5f5   : > { %v1630_v37 = vrot.slane %v1622_v32, %v4782_v62  ;;  %v1646_v38 = vrot.slane %v1638_v34, %v4782_v62  ;;  %v1637_v40 = vrot.slane %v1623_v35, %v4782_v62  ;;  %v1653_v41 = vrot.slane %v1639_v36, %v4782_v62 }
 0x5f7   : > { %v1655_v39 = vcombine.high %v1630_v37, %v1646_v38  ;;  %v1654_v42 = vcombine.low %v1630_v37, %v1646_v38  ;;  %v1656_v43 = vcombine.low %v1637_v40, %v1653_v41  ;;  %v1657_v44 = vcombine.high %v1637_v40, %v1653_v41  ;;  %v4867_v38 = vld [vmem:[%s5186_s6 + $0x4] ss:$0 sm:$0xff] }
 0x5f9   : > { %1659 = vrot.lane.b32.xlu1 %v1655_v39, %s5195_s17  ;;  %s4531_s17 = smov [#allocation2]  }
 0x5fd   : > { %1663 = vrot.lane.b32.xlu1 %v1656_v43, %s5193_s18  ;;  %s352_s18 = scalar_lea.vmem %s5183_s3, %s4657_s25  ;;  %s5211_s25 = smov 8  }
 0x601   : > { %1667 = vrot.lane.b32.xlu1 %v1657_v44, %s5191_s23  ;;  %v4370_v45 = vpop.permute.xlu0 %4369  ;;  %s5212_s23 = smov 16  }
 0x602   : > { %v4372_v46 = vunpack.i.h.bf16 %v4370_v45  ;;  %v4371_v47 = vunpack.i.l.bf16 %v4370_v45 }
 0x604   : > { %v4264_v48 = vpack.c.bf16 %v4372_v46, %v4371_v47 }
 0x605   : > { %v1702_v5 = vpop.permute.xlu0 %1701 }
 0x606   : > { %4265 = vmatpush3.bf16.msra.mxu1 %v4264_v48 }
 0x607   : > { %4272 = vmatprep.subr.bf16.mxu1 %v4515_v3 }
 0x65b   : > { %v4375_v61 = vpop.permute.xlu0 %4374 }
 0x65c   : > { %v4377_v9 = vunpack.i.h.bf16 %v4375_v61  ;;  %v4376_v63 = vunpack.i.l.bf16 %v4375_v61 }
 0x65e   : > { %v4273_v4 = vpack.c.bf16 %v4377_v9, %v4376_v63 }
 0x65f   : > { %v4380_v14 = vpop.permute.xlu0 %4379 }
 0x660   : > { %v4382_v15 = vunpack.i.h.bf16 %v4380_v14  ;;  %v4381_v16 = vunpack.i.l.bf16 %v4380_v14 }
 0x662   : > { %v4276_v17 = vpack.c.bf16 %v4382_v15, %v4381_v16 }
 0x66b   : > { %v1660_v49 = vpop.permute.xlu1 %1659 }
 0x66c   : > { %v1670_v51 = vsel %vm609_vm2, %v1654_v42, %v1660_v49 }
 0x66f   : > { %v1664_v50 = vpop.permute.xlu1 %1663 }
 0x670   : > { %v1672_v52 = vsel %vm1671_vm7, %v1670_v51, %v1664_v50 }
 0x673   : > { %v1668_v53 = vpop.permute.xlu1 %1667 }
 0x674   : > { %v1674_v54 = vsel %vm1673_vm8, %v1672_v52, %v1668_v53 }
 0x675   : > { %4138 = vmatmul.mubr.msk.f32.vlgmr.msra.gmra.mrb[8].mxu1 %vm388_vm1, %v1674_v54  ;;  %v360_v54 = vld [vmem:[%s352_s18] sm:$0x1] }
 0x676   : > { %4159 = vmatprep.mubr.msk.f32.mxu1 %vm4516_vm0, %v4517_v6  ;;  %4274 = vmatpush3.bf16.msra.mxu1 %v4273_v4  ;;  %vm375_vm9 = vcmp.gt.f32.partialorder %v360_v54, 0.5 }
 0x677   : > { %4275 = vmatprep.subr.bf16.mxu1 %v4515_v3  ;;  %v376_v55 = vsel %vm375_vm9, 0.0, %v4523_v33 }
 0x678   : > { %v2427_v56 = vrot.slane %v376_v55, %v4729_v27 }
 0x67a   : > { %4277 = vmatpush3.bf16.msra.mxu1 %v4276_v17 }
 0x67b   : > { %4172 = vmatprep.subr.mxu1 %v4517_v6 }
 0x67d   : > { %4160 = vmatmul.mubr.msk.f32.vlgmr.msra.gmra.mrb[10].mxu1 %vm388_vm1, %v358_v19 }
 0x67e   : > { %4174 = vmatprep.mubr.msk.f32.mxu1 %vm4516_vm0, %v4517_v6 }
 0x748   : > { %v1773_v7 = vpop.f32.mrb[8].mxu1 }
 0x749   : > { %v1774_v10 = vadd.f32 %v1773_v7, %v1702_v5  ;;  %v4139_v11 = vpop.f32.mrb[9].mxu1 }
 0x74b   : > { %v1777_v12 = vadd.f32 %v1774_v10, %v4667_v8 }
 0x74d   : > { %v1780_v13 = vsel %vm388_vm1, %v1777_v12, 0.0 }
 0x74e   : > { %1781 = vadd.xlane.f32.xlu1 %v1780_v13 }
 0x750   : > { %v1982_v25 = vpop.f32.mrb[10].mxu1 }
 0x751   : > { %v4161_v28 = vpop.f32.mrb[11].mxu1 }
 0x75f   : > { %1799 = vrot.lane.b32.xlu1 %v3969_v18, %s5201_s13 }
 0x7db   : > { %v1782_v8 = vpop.xlane.xlu1 %1781 }
 0x7dc   : > { %v1784_v20 = vmul.f32 0.03125, %v1782_v8 }
 0x7de   : > { %v1785_v21 = vsub.f32 %v1777_v12, %v1784_v20 }
 0x7df   : > { %v1800_v36 = vpop.permute.xlu1 %1799 }
 0x7e0   : > { %v1786_v22 = vmul.f32 %v1785_v21, %v1785_v21 }
 0x7e2   : > { %v1787_v23 = vsel %vm388_vm1, %v1786_v22, 0.0 }
 0x7e3   : > { %1788 = vadd.xlane.f32.xlu0 %v1787_v23 }
 0x7f9   : > { %1910 = vrot.lane.b32.xlu0 %v4852_v24, %s4520_s21 }
 0x870   : > { %v1789_v29 = vpop.xlane.xlu0 %1788 }
 0x871   : > { %v1790_v30 = vmul.f32 0.03125, %v1789_v29 }
 0x873   : > { %v1791_v31 = vadd.f32 1e-05, %v1790_v30 }
 0x874   : > { %v1911_v32 = vpop.permute.xlu0 %1910 }
 0x875   : > { %4429 = vrsqrt.f32 %v1791_v31  ;;  %v4856_v34 = vadd.f32 %v1982_v25, %v1911_v32 }
 0x877   : > { %1994 = vrot.lane.b32.xlu1 %v4856_v34, %s4519_s20 }
 0x87b   : > { %1997 = vrot.lane.b32.xlu1 %v4856_v34, %s5209_s10 }
 0x87f   : > { %v4430_v35 = vpop.eup %4429  ;;  %2000 = vrot.lane.b32.xlu1 %v4856_v34, %s5210_s19 }
 0x880   : > { %v1793_v37 = vmul.f32 %v4430_v35, %v1785_v21 }
 0x882   : > { %v1802_v39 = vmul.f32 %v1800_v36, %v1793_v37 }
 0x884   : > { %v4870_v40 = vadd.f32 %v4867_v38, %v1802_v39 }
 0x886   : > { %4149 = vmatmul.mubr.msk.f32.vlgmr.msra.gmra.mrb[10].mxu0 %vm388_vm1, %v4870_v40 }
 0x887   : > { %4164 = vmatprep.mubr.msk.f32.mxu0 %vm4516_vm0, %v4517_v6 }
 0x8e9   : > { %v4876_v41 = vpop.permute.xlu1 %1994 }
 0x8ea   : > { %2035 = vxpose.xlu0.b32.start.end [1/1] (short) (narrow) %v4876_v41, 8 }
 0x8ed   : > { %v4879_v42 = vpop.permute.xlu1 %1997 }
 0x8ee   : > { %2067 = vxpose.xlu0.b32.start.end [1/1] (short) (narrow) %v4879_v42, 8 }
 0x8f1   : > { %v2001_v48 = vpop.permute.xlu1 %2000 }
 0x959   : > { %v1890_v43 = vpop.f32.mrb[10].mxu0 }
 0x95a   : > { %v1891_v44 = vadd.f32 %v4852_v24, %v1890_v43  ;;  %v4150_v45 = vpop.f32.mrb[11].mxu0 }
 0x95c   : > { %1987 = vrot.lane.b32.xlu0 %v1891_v44, %s4519_s20  ;;  %1989 = vrot.lane.b32.xlu1 %v1891_v44, %s5209_s10  ;;  %s5214_s10 = smov 64  }
 0x960   : > { %1991 = vrot.lane.b32.xlu0 %v1891_v44, %s5210_s19 }
 0x96a   : > { %v2051_v46 = vpop.trf.xlu0 }
 0x96e   : > { %v2083_v47 = vpop.trf.xlu0 }
 0x96f   : > { %4173 = vmatpush3.msra.mxu1 %v2083_v47 }
 0x970   : > { %4182 = vmatprep.subr.mxu1 %v4517_v6 }
 0x97e   : > { %2099 = vxpose.xlu0.b32.start.end [1/1] (short) (narrow) %v2001_v48, 8 }
 0x985   : > { %2003 = vxpose.xlu1.b32.start.end [1/1] (short) (narrow) %v4856_v34, 8 }
 0x9ce   : > { %v1990_v49 = vpop.permute.xlu1 %1989  ;;  %v1988_v50 = vpop.permute.xlu0 %1987 }
 0x9cf   : > { %4175 = vmatmul.mubr.msk.f32.vlgmr.msra.gmra.mrb[12].mxu1 %vm609_vm2, %v1990_v49 }
 0x9d0   : > { %4184 = vmatprep.mubr.msk.f32.mxu1 %vm4516_vm0, %v4517_v6 }
 0x9d2   : > { %v1992_v51 = vpop.permute.xlu0 %1991 }
 0x9fe   : > { %v2115_v53 = vpop.trf.xlu0 }
 0xa05   : > { %v2019_v52 = vpop.trf.xlu1 }
 0xa06   : > { %4163 = vmatpush3.msra.mxu0 %v2019_v52 }
 0xa07   : > { %4165 = vmatmul.mubr.msk.f32.vlgmr.msra.gmra.mrb[12].mxu0 %vm609_vm2, %v1891_v44  ;;  %4167 = vmatprep.subr.mxu0 %v4517_v6 }
 0xa08   : > { %4168 = vmatpush3.msra.mxu0 %v2051_v46  ;;  %4169 = vmatprep.mubr.msk.f32.mxu0 %vm4516_vm0, %v4517_v6 }
 0xa09   : > { %4177 = vmatprep.subr.mxu0 %v4517_v6 }
 0xa0b   : > { %4170 = vmatmul.mubr.msk.f32.vlgmr.msra.gmra.mrb[14].mxu0 %vm609_vm2, %v1988_v50 }
 0xa0c   : > { %4178 = vmatpush3.msra.mxu0 %v2115_v53  ;;  %4179 = vmatprep.mubr.msk.f32.mxu0 %vm4516_vm0, %v4517_v6 }
 0xa0d   : > { %4187 = vmatprep.subr.mxu0 %v4517_v6 }
 0xa0f   : > { %4180 = vmatmul.mubr.msk.f32.vlgmr.msra.gmra.mrb[16].mxu0 %vm609_vm2, %v1992_v51 }
 0xa10   : > { %4189 = vmatprep.mubr.msk.f32.mxu0 %vm4516_vm0, %v4517_v6 }
 0xaa2   : > { %v2343_v57 = vpop.f32.mrb[12].mxu1 }
 0xaa3   : > { %v2421_v0 = vmul.f32 0.35355338, %v2343_v57  ;;  %v4176_v59 = vpop.f32.mrb[13].mxu1 }
 0xaa5   : > { %v2431_v2 = vadd.f32 %v2427_v56, %v2421_v0 }
 0xaa7   : > { %v2439_v15 = vsel %vm609_vm2, %v2431_v2, -inf }
 0xada   : > { %v2199_v5 = vpop.f32.mrb[12].mxu0 }
 0xadb   : > { %v2419_v61 = vmul.f32 0.35355338, %v2199_v5  ;;  %v4166_v9 = vpop.f32.mrb[13].mxu0 }
 0xadd   : > { %v2429_v63 = vadd.f32 %v2427_v56, %v2419_v61 }
 0xade   : > { %v2271_v4 = vpop.f32.mrb[14].mxu0 }
 0xadf   : > { %v2420_v7 = vmul.f32 0.35355338, %v2271_v4  ;;  %v4171_v10 = vpop.f32.mrb[15].mxu0  ;;  %v2433_v11 = vsel %vm609_vm2, %v2429_v63, -inf }
 0xae0   : > { %2434 = vmax.xlane.f32.xlu1 %v2433_v11 }
 0xae1   : > { %v2430_v12 = vadd.f32 %v2427_v56, %v2420_v7 }
 0xae2   : > { %v2415_v13 = vpop.f32.mrb[16].mxu0 }
 0xae3   : > { %v2422_v14 = vmul.f32 0.35355338, %v2415_v13  ;;  %v4181_v33 = vpop.f32.mrb[17].mxu0  ;;  %v2436_v16 = vsel %vm609_vm2, %v2430_v12, -inf }
 0xae4   : > { %2440 = vmax.xlane.f32.xlu1 %v2439_v15  ;;  %2437 = vmax.xlane.f32.xlu0 %v2436_v16 }
 0xae5   : > { %v2432_v17 = vadd.f32 %v2427_v56, %v2422_v14 }
 0xae7   : > { %v2442_v18 = vsel %vm609_vm2, %v2432_v17, -inf }
 0xae8   : > { %2443 = vmax.xlane.f32.xlu1 %v2442_v18 }
 0xaf9   : > { %2479 = vrot.lane.b32.xlu1 %v4876_v41, %s4520_s21 }
 0xafa   : > { %2477 = vrot.lane.b32.xlu0 %v4856_v34, %s4520_s21 }
 0xafd   : > { %2481 = vrot.lane.b32.xlu1 %v4879_v42, %s4520_s21 }
 0xafe   : > { %2483 = vrot.lane.b32.xlu0 %v2001_v48, %s4520_s21 }
 0xb6d   : > { %v2435_v19 = vpop.xlane.xlu1 %2434 }
 0xb6e   : > { %v2445_v8 = vsub.f32 %v2429_v63, %v2435_v19 }
 0xb70   : > { %v2449_v20 = vmul.f32 1.442695, %v2445_v8 }
 0xb71   : > { %v2441_v21 = vpop.xlane.xlu1 %2440  ;;  %v2438_v22 = vpop.xlane.xlu0 %2437 }
 0xb72   : > { %4431 = vpow2.f32 %v2449_v20  ;;  %v2447_v23 = vsub.f32 %v2431_v2, %v2441_v21  ;;  %v2446_v25 = vsub.f32 %v2430_v12, %v2438_v22 }
 0xb74   : > { %v2451_v28 = vmul.f32 1.442695, %v2446_v25  ;;  %v2453_v29 = vmul.f32 1.442695, %v2447_v23 }
 0xb75   : > { %v2444_v30 = vpop.xlane.xlu1 %2443  ;;  %v2478_v45 = vpop.permute.xlu0 %2477 }
 0xb76   : > { %v2448_v31 = vsub.f32 %v2432_v17, %v2444_v30  ;;  %4433 = vpow2.f32 %v2451_v28 }
 0xb77   : > { %4435 = vpow2.f32 %v2453_v29 }
 0xb78   : > { %v2455_v32 = vmul.f32 1.442695, %v2448_v31 }
 0xb79   : > { %v2480_v44 = vpop.permute.xlu1 %2479  ;;  %v2484_v47 = vpop.permute.xlu0 %2483 }
 0xb7a   : > { %4437 = vpow2.f32 %v2455_v32 }
 0xb7c   : > { %v4432_v34 = vpop.eup %4431 }
 0xb7d   : > { %v2457_v35 = vsel %vm609_vm2, %v4432_v34, 0.0  ;;  %v2482_v46 = vpop.permute.xlu1 %2481 }
 0xb7e   : > { %2458 = vadd.xlane.f32.xlu1 %v2457_v35 }
 0xb80   : > { %v4434_v36 = vpop.eup %4433 }
 0xb81   : > { %v2460_v37 = vsel %vm609_vm2, %v4434_v36, 0.0  ;;  %v4436_v39 = vpop.eup %4435 }
 0xb82   : > { %2461 = vadd.xlane.f32.xlu0 %v2460_v37  ;;  %v2463_v43 = vsel %vm609_vm2, %v4436_v39, 0.0 }
 0xb84   : > { %v4438_v41 = vpop.eup %4437 }
 0xb85   : > { %v2466_v42 = vsel %vm609_vm2, %v4438_v41, 0.0 }
 0xb86   : > { %2467 = vadd.xlane.f32.xlu1 %v2466_v42  ;;  %2464 = vadd.xlane.f32.xlu0 %v2463_v43 }
 0xbb3   : > { %2489 = vxpose.xlu0.b32.start.end [1/1] (short) (narrow) %v2478_v45, 8 }
 0xbb7   : > { %2553 = vxpose.xlu0.b32.start.end [1/1] (short) (narrow) %v2482_v46, 8 }
 0xbb9   : > { %2521 = vxpose.xlu1.b32.start.end [1/1] (short) (narrow) %v2480_v44, 8 }
 0xbbb   : > { %2585 = vxpose.xlu0.b32.start.end [1/1] (short) (narrow) %v2484_v47, 8 }
 0xc0b   : > { %v2459_v48 = vpop.xlane.xlu1 %2458 }
 0xc0c   : > { %4439 = vrcp.f32 %v2459_v48 }
 0xc0f   : > { %v2462_v49 = vpop.xlane.xlu0 %2461 }
 0xc10   : > { %4441 = vrcp.f32 %v2462_v49 }
 0xc13   : > { %v2468_v50 = vpop.xlane.xlu1 %2467  ;;  %v2465_v51 = vpop.xlane.xlu0 %2464 }
 0xc14   : > { %4443 = vrcp.f32 %v2468_v50 }
 0xc15   : > { %4445 = vrcp.f32 %v2465_v51 }
 0xc16   : > { %v4440_v52 = vpop.eup %4439 }
 0xc17   : > { %v2470_v53 = vmul.f32 %v4440_v52, %v4432_v34 }
 0xc19   : > { %4183 = vmatpush3.xpose.msk.msra.mxu1 %vm609_vm2, %v2470_v53 }
 0xc1a   : > { %4192 = vmatprep.subr.mxu1 %v4517_v6  ;;  %v4442_v54 = vpop.eup %4441 }
 0xc1b   : > { %v2472_v55 = vmul.f32 %v4442_v54, %v4434_v36 }
 0xc1d   : > { %4188 = vmatpush3.xpose.msk.msra.mxu0 %vm609_vm2, %v2472_v55 }
 0xc1e   : > { %v4444_v56 = vpop.eup %4443  ;;  %4197 = vmatprep.subr.mxu0 %v4517_v6 }
 0xc1f   : > { %v4446_v57 = vpop.eup %4445  ;;  %v2476_v0 = vmul.f32 %v4444_v56, %v4438_v41 }
 0xc20   : > { %v2474_v59 = vmul.f32 %v4446_v57, %v4436_v39 }
 0xc21   : > { %v3672_v2 = vcombine.low %v2472_v55, %v2476_v0  ;;  %v3673_v5 = vcombine.high %v2472_v55, %v2476_v0 }
 0xc22   : > { %v3656_v61 = vcombine.low %v2470_v53, %v2474_v59  ;;  %v3657_v9 = vcombine.high %v2470_v53, %v2474_v59 }
 0xc23   : > { %v3680_v63 = vrot.slane %v3672_v2, %v4779_v1  ;;  %v3687_v4 = vrot.slane %v3673_v5, %v4779_v1 }
 0xc24   : > { %v3664_v7 = vrot.slane %v3656_v61, %v4779_v1  ;;  %v3671_v10 = vrot.slane %v3657_v9, %v4779_v1 }
 0xc26   : > { %v3688_v11 = vcombine.low %v3664_v7, %v3680_v63  ;;  %v3689_v12 = vcombine.high %v3664_v7, %v3680_v63  ;;  %v3704_v13 = vcombine.low %v3671_v10, %v3687_v4  ;;  %v3705_v14 = vcombine.high %v3671_v10, %v3687_v4 }
 0xc28   : > { %v3696_v33 = vrot.slane %v3688_v11, %v4782_v62  ;;  %v3703_v15 = vrot.slane %v3689_v12, %v4782_v62  ;;  %v3712_v16 = vrot.slane %v3704_v13, %v4782_v62  ;;  %v3719_v17 = vrot.slane %v3705_v14, %v4782_v62 }
 0xc2a   : > { %v3724_v18 = vcombine.low %v3696_v33, %v3703_v15  ;;  %v3996_v19 = vcombine.high %v3696_v33, %v3703_v15  ;;  %v3740_v8 = vcombine.low %v3712_v16, %v3719_v17  ;;  %v3997_v20 = vcombine.high %v3712_v16, %v3719_v17 }
 0xc2c   : > { %v3731_v21 = vrot.slane %v3724_v18, %v4779_v1  ;;  %v3739_v22 = vrot.slane %v3996_v19, %v4779_v1  ;;  %v3747_v23 = vrot.slane %v3740_v8, %v4779_v1  ;;  %v3755_v25 = vrot.slane %v3997_v20, %v4779_v1 }
 0xc2e   : > { %v3757_v28 = vcombine.high %v3731_v21, %v3739_v22  ;;  %v3773_v29 = vcombine.high %v3747_v23, %v3755_v25  ;;  %v3756_v30 = vcombine.low %v3731_v21, %v3739_v22  ;;  %v3772_v31 = vcombine.low %v3747_v23, %v3755_v25 }
 0xc30   : > { %v4941_v32 = vrot.slane %v3757_v28, %v4782_v62  ;;  %v4944_v34 = vrot.slane %v3773_v29, %v4782_v62  ;;  %v4947_v35 = vrot.slane %v3756_v30, %v4782_v62  ;;  %v4950_v36 = vrot.slane %v3772_v31, %v4782_v62 }
 0xc32   : > { %v3790_v37 = vcombine.low %v4941_v32, %v4944_v34  ;;  %v3789_v39 = vcombine.high %v4947_v35, %v4950_v36  ;;  %v3791_v41 = vcombine.high %v4941_v32, %v4944_v34  ;;  %v3788_v42 = vcombine.low %v4947_v35, %v4950_v36 }
 0xc33   : > { %v2505_v43 = vpop.trf.xlu0 }
 0xc34   : > { %4185 = vmatmul.mubr.msk.f32.vlgmr.msra.gmra.mrb[14].mxu1 %vm609_vm2, %v2505_v43 }
 0xc35   : > { %4193 = vmatpush3.xpose.msk.msra.mxu1 %vm609_vm2, %v2474_v59  ;;  %4194 = vmatprep.mubr.msk.f32.mxu1 %vm4516_vm0, %v4517_v6 }
 0xc36   : > { %4278 = vmatprep.subr.bf16.mxu1 %v4515_v3 }
 0xc37   : > { %v2569_v44 = vpop.trf.xlu0 }
 0xc38   : > { %4195 = vmatmul.mubr.msk.f32.vlgmr.msra.gmra.mrb[16].mxu1 %vm609_vm2, %v2569_v44 }
 0xc39   : > { %v2537_v45 = vpop.trf.xlu1  ;;  %4210 = vmatprep.mubr.msk.f32.mxu1 %vm4516_vm0, %v4517_v6 }
 0xc3a   : > { %4190 = vmatmul.mubr.msk.f32.vlgmr.msra.gmra.mrb[18].mxu0 %vm609_vm2, %v2537_v45 }
 0xc3b   : > { %4198 = vmatpush3.xpose.msk.msra.mxu0 %vm609_vm2, %v2476_v0  ;;  %4199 = vmatprep.mubr.msk.f32.mxu0 %vm4516_vm0, %v4517_v6  ;;  %v2601_v46 = vpop.trf.xlu0 }
 0xc3c   : > { %4284 = vmatprep.subr.bf16.mxu0 %v4515_v3 }
 0xc3e   : > { %4200 = vmatmul.mubr.msk.f32.vlgmr.msra.gmra.mrb[20].mxu0 %vm609_vm2, %v2601_v46 }
 0xc3f   : > { %4221 = vmatprep.mubr.msk.f32.mxu0 %vm4516_vm0, %v4517_v6 }
 0xd07   : > { %v2689_v47 = vpop.f32.mrb[14].mxu1 }
 0xd08   : > { %v4186_v48 = vpop.f32.mrb[15].mxu1  ;;  %2921 = vxpose.xlu1.b32.start.end [1/1] (short) (narrow) %v2689_v47, 8 }
 0xd0b   : > { %v2841_v49 = vpop.f32.mrb[16].mxu1 }
 0xd0c   : > { %v4196_v51 = vpop.f32.mrb[17].mxu1  ;;  %2985 = vxpose.xlu1.b32.start.end [1/1] (short) (narrow) %v2841_v49, 8 }
 0xd0d   : > { %v2765_v50 = vpop.f32.mrb[18].mxu0 }
 0xd0e   : > { %2953 = vxpose.xlu0.b32.start.end [1/1] (short) (narrow) %v2765_v50, 8  ;;  %v4191_v52 = vpop.f32.mrb[19].mxu0 }
 0xd11   : > { %v2917_v53 = vpop.f32.mrb[20].mxu0 }
 0xd12   : > { %3017 = vxpose.xlu0.b32.start.end [1/1] (short) (narrow) %v2917_v53, 8  ;;  %v4201_v54 = vpop.f32.mrb[21].mxu0 }
 0xd2a   : > { %4384 = vrot.lane.b32.xlu1 %v4820_v58, %s5201_s13 }
 0xd3b   : > { %4389 = vrot.lane.b32.xlu0 %v4827_v60, %s5201_s13 }
 0xd3f   : > { %3226 = vrot.lane.b32.xlu0 %v4852_v24, %s5201_s13  ;;  %s5215_s13 = smov 32  }
 0xd88   : > { %v2937_v55 = vpop.trf.xlu1 }
 0xd8c   : > { %v3001_v57 = vpop.trf.xlu1 }
 0xd8d   : > { %v3049_v0 = vcombine.low %v2937_v55, %v3001_v57  ;;  %v3050_v59 = vcombine.high %v2937_v55, %v3001_v57 }
 0xd8e   : > { %v2969_v56 = vpop.trf.xlu0 }
 0xd8f   : > { %v3057_v9 = vrot.slane %v3049_v0, %v4779_v1  ;;  %v3064_v63 = vrot.slane %v3050_v59, %v4779_v1 }
 0xd92   : > { %v3033_v2 = vpop.trf.xlu0 }
 0xd93   : > { %v3065_v5 = vcombine.low %v2969_v56, %v3033_v2  ;;  %v3066_v61 = vcombine.high %v2969_v56, %v3033_v2 }
 0xd95   : > { %v3073_v58 = vrot.slane %v3065_v5, %v4779_v1  ;;  %v3080_v4 = vrot.slane %v3066_v61, %v4779_v1 }
 0xd97   : > { %v3081_v60 = vcombine.low %v3057_v9, %v3073_v58  ;;  %v3082_v7 = vcombine.high %v3057_v9, %v3073_v58  ;;  %v3097_v10 = vcombine.low %v3064_v63, %v3080_v4  ;;  %v3098_v24 = vcombine.high %v3064_v63, %v3080_v4 }
 0xd99   : > { %v3089_v11 = vrot.slane %v3081_v60, %v4782_v62  ;;  %v3096_v12 = vrot.slane %v3082_v7, %v4782_v62  ;;  %v3105_v13 = vrot.slane %v3097_v10, %v4782_v62  ;;  %v3112_v14 = vrot.slane %v3098_v24, %v4782_v62  ;;  %v5017_v24 = vld [vmem:[%s5184_s4 + $0x10] sm:$0xff] }
 0xd9b   : > { %v3117_v33 = vcombine.low %v3089_v11, %v3096_v12  ;;  %v3986_v15 = vcombine.high %v3089_v11, %v3096_v12  ;;  %v3133_v16 = vcombine.low %v3105_v13, %v3112_v14  ;;  %v3987_v17 = vcombine.high %v3105_v13, %v3112_v14  ;;  %v3332_v12 = vld [vmem:[%s5184_s4 + $0x50] sm:$0xff] }
 0xd9c   : > { %v4385_v21 = vpop.permute.xlu1 %4384  ;;  %v5032_v13 = vld [vmem:[%s5184_s4 + $0x70] sm:$0xff] }
 0xd9d   : > { %v3124_v18 = vrot.slane %v3117_v33, %v4779_v1  ;;  %v3132_v19 = vrot.slane %v3986_v15, %v4779_v1  ;;  %v3140_v8 = vrot.slane %v3133_v16, %v4779_v1  ;;  %v3148_v20 = vrot.slane %v3987_v17, %v4779_v1  ;;  %v3415_v33 = vld [vmem:[%s5185_s5] sm:$0xff]  ;;  %v3416_v15 = vld [vmem:[%s5185_s5 + $0x8] sm:$0xff]  ;;  %v3417_v16 = vld [vmem:[%s5185_s5 + $0x10] sm:$0xff] }
 0xd9e   : > { %v4387_v22 = vunpack.i.h.bf16 %v4385_v21  ;;  %v4386_v23 = vunpack.i.l.bf16 %v4385_v21  ;;  %v4288_v14 = vpack.c.bf16 %v5032_v13, %v3332_v12  ;;  %v4291_v17 = vpack.c.bf16 %v3416_v15, %v3415_v33  ;;  %v3420_v21 = vld [vmem:[%s5185_s5 + $0x28] sm:$0xff] }
 0xd9f   : > { %v3149_v25 = vcombine.low %v3124_v18, %v3132_v19  ;;  %v3165_v28 = vcombine.low %v3140_v8, %v3148_v20  ;;  %v3150_v29 = vcombine.high %v3124_v18, %v3132_v19  ;;  %v3166_v30 = vcombine.high %v3140_v8, %v3148_v20  ;;  %v3418_v18 = vld [vmem:[%s5185_s5 + $0x18] sm:$0xff]  ;;  %v3991_v19 = vld [vmem:[%s5186_s6 + $0x2] ss:$0 sm:$0xff] }
 0xda0   : > { %v4279_v31 = vpack.c.bf16 %v4387_v22, %v4386_v23  ;;  %v4294_v8 = vpack.c.bf16 %v3418_v18, %v3417_v16  ;;  %v3419_v20 = vld [vmem:[%s5185_s5 + $0x20] sm:$0xff] }
 0xda1   : > { %v3157_v43 = vrot.slane %v3149_v25, %v4782_v62  ;;  %v3173_v44 = vrot.slane %v3165_v28, %v4782_v62  ;;  %v3164_v46 = vrot.slane %v3150_v29, %v4782_v62  ;;  %v3180_v47 = vrot.slane %v3166_v30, %v4782_v62 }
 0xda2   : > { %4280 = vmatpush3.bf16.msra.mxu1 %v4279_v31  ;;  %v4297_v22 = vpack.c.bf16 %v3420_v21, %v3419_v20 }
 0xda3   : > { %v3182_v45 = vcombine.high %v3157_v43, %v3173_v44  ;;  %v3181_v48 = vcombine.low %v3157_v43, %v3173_v44  ;;  %4281 = vmatprep.subr.bf16.mxu1 %v4515_v3  ;;  %v3183_v1 = vcombine.low %v3164_v46, %v3180_v47  ;;  %v3184_v49 = vcombine.high %v3164_v46, %v3180_v47  ;;  %v3421_v46 = vld [vmem:[%s5185_s5 + $0x30] sm:$0xff]  ;;  %v3422_v47 = vld [vmem:[%s5185_s5 + $0x38] sm:$0xff] }
 0xda5   : > { %3186 = vrot.lane.b32.xlu1 %v3182_v45, %s5211_s25 }
 0xda9   : > { %3190 = vrot.lane.b32.xlu1 %v3183_v1, %s5212_s23 }
 0xdad   : > { %3194 = vrot.lane.b32.xlu1 %v3184_v49, %s5213_s24  ;;  %v4390_v50 = vpop.permute.xlu0 %4389 }
 0xdae   : > { %v4392_v51 = vunpack.i.h.bf16 %v4390_v50  ;;  %v4391_v52 = vunpack.i.l.bf16 %v4390_v50 }
 0xdb0   : > { %v4282_v53 = vpack.c.bf16 %v4392_v51, %v4391_v52 }
 0xdb1   : > { %v3227_v59 = vpop.permute.xlu0 %3226 }
 0xdb2   : > { %4283 = vmatpush3.bf16.msra.mxu1 %v4282_v53 }
 0xdb3   : > { %4290 = vmatprep.subr.bf16.mxu1 %v4515_v3 }
 0xe17   : > { %v3187_v54 = vpop.permute.xlu1 %3186 }
 0xe18   : > { %v3197_v55 = vsel %vm609_vm2, %v3181_v48, %v3187_v54  ;;  %v4300_v48 = vpack.c.bf16 %v3422_v47, %v3421_v46  ;;  %v3994_v47 = vld [vmem:[%s5186_s6 + $0x5] ss:$0 sm:$0xff] }
 0xe1b   : > { %v3191_v62 = vpop.permute.xlu1 %3190 }
 0xe1c   : > { %v3198_v56 = vsel %vm1671_vm7, %v3197_v55, %v3191_v62 }
 0xe1f   : > { %v3195_v57 = vpop.permute.xlu1 %3194 }
 0xe20   : > { %v3199_v0 = vsel %vm1673_vm8, %v3198_v56, %v3195_v57 }
 0xe21   : > { %4211 = vmatmul.mubr.msk.f32.vlgmr.msra.gmra.mrb[18].mxu1 %vm388_vm1, %v3199_v0  ;;  %v3527_v0 = vld [vmem:[%s5184_s4 + $0x18] sm:$0xff] }
 0xe22   : > { %4240 = vmatprep.mubr.msk.f32.mxu1 %vm4516_vm0, %v4517_v6  ;;  %4292 = vmatpush3.bf16.msra.mxu1 %v4291_v17 }
 0xe23   : > { %4293 = vmatprep.subr.bf16.mxu1 %v4515_v3 }
 0xe26   : > { %4295 = vmatpush3.bf16.msra.mxu1 %v4294_v8 }
 0xe27   : > { %4296 = vmatprep.subr.bf16.mxu1 %v4515_v3 }
 0xe2a   : > { %4298 = vmatpush3.bf16.msra.mxu1 %v4297_v22 }
 0xe2b   : > { %4299 = vmatprep.subr.bf16.mxu1 %v4515_v3 }
 0xe2e   : > { %4301 = vmatpush3.bf16.msra.mxu1 %v4300_v48 }
 0xef4   : > { %v3298_v2 = vpop.f32.mrb[18].mxu1 }
 0xef5   : > { %v3299_v5 = vadd.f32 %v3298_v2, %v3227_v59  ;;  %v4212_v61 = vpop.f32.mrb[19].mxu1  ;;  %v4393_v59 = vpack.i.bf16 %v3527_v0, %v5017_v24  ;;  %v3531_v2 = vld [vmem:[%s5184_s4 + $0x58] sm:$0xff] }
 0xef6   : > { %v3542_v61 = vsub.s32 1, %v4726_v26 }
 0xef7   : > { %v3302_v9 = vadd.f32 %v3299_v5, %v4870_v40  ;;  %v3331_v40 = vld [vmem:[%s5184_s4 + $0x30] sm:$0xff]  ;;  %v4403_v5 = vpack.i.bf16 %v3531_v2, %v3332_v12 }
 0xef8   : > { %v4285_v11 = vpack.c.bf16 %v3331_v40, %v5017_v24 }
 0xef9   : > { %v3304_v63 = vsel %vm388_vm1, %v3302_v9, 0.0 }
 0xefa   : > { %3305 = vadd.xlane.f32.xlu1 %v3304_v63  ;;  %4286 = vmatpush3.bf16.msra.mxu0 %v4285_v11 }
 0xefb   : > { %4287 = vmatprep.subr.bf16.mxu0 %v4515_v3 }
 0xefe   : > { %4289 = vmatpush3.bf16.msra.mxu0 %v4288_v14 }
 0xeff   : > { %4302 = vmatprep.subr.bf16.mxu0 %v4515_v3 }
 0xf0b   : > { %3326 = vrot.lane.b32.xlu1 %v4867_v38, %s5214_s10 }
 0xf0f   : > { %3423 = vrot.lane.b32.xlu1 %v3991_v19, %s5214_s10 }
 0xf87   : > { %v3306_v58 = vpop.xlane.xlu1 %3305 }
 0xf88   : > { %v3307_v4 = vmul.f32 0.03125, %v3306_v58 }
 0xf8a   : > { %v3308_v60 = vsub.f32 %v3302_v9, %v3307_v4  ;;  %v3534_v9 = vld [vmem:[%s5186_s6 + $0x2] sm:$0x3] }
 0xf8b   : > { %v3327_v43 = vpop.permute.xlu1 %3326  ;;  %v3543_v63 = vrot.slane %v3534_v9, %v3542_v61  ;;  %v3539_v17 = vrot.slane %v3534_v9, %v4729_v27 }
 0xf8c   : > { %v3309_v7 = vmul.f32 %v3308_v60, %v3308_v60 }
 0xf8e   : > { %v3310_v10 = vsel %vm388_vm1, %v3309_v7, 0.0 }
 0xf8f   : > { %3311 = vadd.xlane.f32.xlu0 %v3310_v10  ;;  %v3424_v53 = vpop.permute.xlu1 %3423 }
 0xfa5   : > { %3322 = vrot.lane.b32.xlu0 %v4867_v38, %s4520_s21 }
0x101c   : > { %v3312_v23 = vpop.xlane.xlu0 %3311 }
0x101d   : > { %v3313_v25 = vmul.f32 0.03125, %v3312_v23 }
0x101f   : > { %v3314_v28 = vadd.f32 1e-05, %v3313_v25 }
0x1020   : > { %v3323_v30 = vpop.permute.xlu0 %3322 }
0x1021   : > { %4447 = vrsqrt.f32 %v3314_v28 }
0x102b   : > { %v4448_v29 = vpop.eup %4447 }
0x102c   : > { %v3316_v31 = vmul.f32 %v4448_v29, %v3308_v60 }
0x102e   : > { %v3325_v44 = vmul.f32 %v3323_v30, %v3316_v31 }
0x1030   : > { %v3329_v45 = vadd.f32 %v3327_v43, %v3325_v44 }
0x1032   : > { %4222 = vmatmul.mubr.msk.f32.vlgmr.msra.gmra.mrb[22].mxu0 %vm388_vm1, %v3329_v45 }
0x1033   : > { %4251 = vmatprep.mubr.msk.f32.mxu0 %vm4516_vm0, %v4517_v6  ;;  %v3529_v6 = vld [vmem:[%s5184_s4 + $0x38] sm:$0xff] }
0x1034   : > { %v4398_v52 = vpack.i.bf16 %v3529_v6, %v3331_v40 }
0x1036   : > { %4399 = vrot.lane.b32.xlu1 %v4398_v52, %s5214_s10 }
0x10a8   : > { %v4400_v58 = vpop.permute.xlu1 %4399 }
0x10a9   : > { %v4402_v7 = vunpack.i.h.bf16 %v4400_v58  ;;  %v4401_v26 = vunpack.i.l.bf16 %v4400_v58 }
0x1105   : > { %v3410_v1 = vpop.f32.mrb[22].mxu0 }
0x1106   : > { %v3411_v49 = vadd.f32 %v3991_v19, %v3410_v1  ;;  %v4223_v50 = vpop.f32.mrb[23].mxu0 }
0x1108   : > { %v3414_v51 = vmax.f32 %v3411_v49, 0.0 }
0x110a   : > { %4241 = vmatmul.mubr.msk.f32.vlgmr.msra.gmra.mrb[20].mxu1 %vm3426_vm10, %v3414_v51 }
0x11dd   : > { %v3496_v54 = vpop.f32.mrb[20].mxu1 }
0x11de   : > { %v3497_v62 = vadd.f32 %v3496_v54, %v3424_v53  ;;  %v4242_v55 = vpop.f32.mrb[21].mxu1 }
0x11e0   : > { %v3500_v56 = vadd.f32 %v3497_v62, %v3329_v45 }
0x11e2   : > { %v3502_v57 = vsel %vm388_vm1, %v3500_v56, 0.0 }
0x11e3   : > { %3503 = vadd.xlane.f32.xlu0 %v3502_v57 }
0x11f9   : > { %4394 = vrot.lane.b32.xlu0 %v4393_v59, %s5214_s10 }
0x11fd   : > { %4404 = vrot.lane.b32.xlu0 %v4403_v5, %s5214_s10 }
0x1201   : > { %3515 = vrot.lane.b32.xlu0 %v4867_v38, %s5215_s13  ;;  %v3569_v38 = vsel %vm3426_vm10, %v4401_v26, %v4402_v7 }
0x1205   : > { %3578 = vrot.lane.b32.xlu0 %v3543_v63, %s5215_s13 }
0x1209   : > { %3797 = vrot.lane.b32.xlu0 %v3790_v37, %s5212_s23  ;;  %v3533_v37 = vld [vmem:[%s5184_s4 + $0x78] sm:$0xff]  ;;  %s3810_s23 = scalar_lea.sflag [#allocation3], %s330_s22 }
0x120a   : > { %v4408_v16 = vpack.i.bf16 %v3533_v37, %v5032_v13 }
0x1270   : > { %v3504_v4 = vpop.xlane.xlu0 %3503 }
0x1271   : > { %v3505_v60 = vmul.f32 0.03125, %v3504_v4 }
0x1273   : > { %v3506_v10 = vsub.f32 %v3500_v56, %v3505_v60 }
0x1274   : > { %v4395_v24 = vpop.permute.xlu0 %4394 }
0x1275   : > { %v4397_v40 = vunpack.i.h.bf16 %v4395_v24  ;;  %v4396_v11 = vunpack.i.l.bf16 %v4395_v24  ;;  %v3507_v12 = vmul.f32 %v3506_v10, %v3506_v10 }
0x1277   : > { %v3568_v14 = vsel %vm3426_vm10, %v4396_v11, %v4397_v40  ;;  %v3508_v33 = vsel %vm388_vm1, %v3507_v12, 0.0 }
0x1278   : > { %3509 = vadd.xlane.f32.xlu1 %v3508_v33  ;;  %v4303_v15 = vpack.c.bf16 %v3569_v38, %v3568_v14 }
0x127a   : > { %4304 = vmatpush3.bf16.msra.mxu0 %v4303_v15 }
0x127b   : > { %4305 = vmatprep.subr.bf16.mxu0 %v4515_v3  ;;  %v4405_v3 = vpop.permute.xlu0 %4404 }
0x127c   : > { %v4407_v19 = vunpack.i.h.bf16 %v4405_v3  ;;  %v4406_v13 = vunpack.i.l.bf16 %v4405_v3 }
0x127e   : > { %v3570_v22 = vsel %vm3426_vm10, %v4406_v13, %v4407_v19 }
0x127f   : > { %v3516_v20 = vpop.permute.xlu0 %3515 }
0x1283   : > { %v3579_v32 = vpop.permute.xlu0 %3578 }
0x1287   : > { %v3798_v31 = vpop.permute.xlu0 %3797 }
0x1289   : > { %4409 = vrot.lane.b32.xlu1 %v4408_v16, %s5214_s10  ;;  %s356_s10 = scalar_lea.vmem %s5188_s8, %s4661_s26  ;;  %s3999_s26 = sshll.u32 %s4598_s9, 7 }
0x128a   : > { %s4451_s9 = scalar_lea.vmem %s5140_s12, 128 }
0x128b   : > { %p4452_p11 = scmp.ne.s32.totalorder %s5140_s12, %s4451_s9 }
0x128d   : > { %3576 = vrot.lane.b32.xlu1 %v3539_v17, %s5215_s13  ;;  %s5138_s13 = scalar_lea.hbm %s5187_s7, %s3999_s26  ;;  %p4453_p12 = pnand %p4452_p11, %p4615_p5 }
0x128f   : > { %p4454_p13 = pneg %p4453_p12 }
0x1291   : > { %3793 = vrot.lane.b32.xlu1 %v3789_v39, %s5211_s25  ;;  %s4455_s25 = sshll.u32 %s4531_s17, 4  ;;  %s4456_s25 = int_to_ptr.vmem [resolvable:$false] %s4455_s25 }
0x1292   : > { %p4458_p0 = scmp.lt.s32.totalorder %s5140_s12, %s4456_s25 }
0x1295   : > { %3801 = vrot.lane.b32.xlu1 %v3791_v41, %s5213_s24  ;;  %s4457_s24 = scalar_lea.vmem %s4456_s25, 256 }
0x1296   : > { %p4459_p1 = scmp.lt.s32.totalorder %s4457_s24, %s4451_s9 }
0x1298   : > { %p4460_p2 = por %p4459_p1, %p4458_p0 }
0x129a   : > { %p4461_p3 = pnand %p4460_p2, %p4454_p13 }
0x1305   : > { %v3510_v18 = vpop.xlane.xlu1 %3509 }
0x1306   : > { %v3511_v8 = vmul.f32 0.03125, %v3510_v18 }
0x1308   : > { %v3512_v21 = vadd.f32 1e-05, %v3511_v8 }
0x1309   : > { %v4410_v27 = vpop.permute.xlu1 %4409 }
0x130a   : > { %4449 = vrsqrt.f32 %v3512_v21  ;;  %v4412_v23 = vunpack.i.h.bf16 %v4410_v27  ;;  %v4411_v25 = vunpack.i.l.bf16 %v4410_v27 }
0x130c   : > { %v3571_v39 = vsel %vm3426_vm10, %v4411_v25, %v4412_v23 }
0x130d   : > { %v4306_v28 = vpack.c.bf16 %v3571_v39, %v3570_v22  ;;  %v3577_v29 = vpop.permute.xlu1 %3576 }
0x130e   : > { %v3580_v48 = vsel %vm388_vm1, %v3577_v29, %v3579_v32 }
0x130f   : > { %4307 = vmatpush3.bf16.msra.mxu0 %v4306_v28 }
0x1311   : > { %v3794_v34 = vpop.permute.xlu1 %3793 }
0x1312   : > { %v3804_v41 = vsel %vm609_vm2, %v3788_v42, %v3794_v34 }
0x1313   : > { %v3805_v45 = vsel %vm1671_vm7, %v3804_v41, %v3798_v31 }
0x1314   : > { %v4450_v30 = vpop.eup %4449 }
0x1315   : > { %v3514_v43 = vmul.f32 %v4450_v30, %v3506_v10  ;;  %v3802_v44 = vpop.permute.xlu1 %3801 }
0x1316   : > { %v3806_v46 = vsel %vm1673_vm8, %v3805_v45, %v3802_v44 }
0x1317   : > { %v3807_v35 = vsel %vm388_vm1, %v3806_v46, 0.0  ;;  %v3518_v36 = vmul.f32 %v3516_v20, %v3514_v43 }
0x1318   : > { %3808 = vst [vmem:[%s356_s10] sm:$0xff] %v3807_v35 }
0x1319   : > { %v3525_v42 = vadd.f32 %v3994_v47, %v3518_v36 }
0x131b   : > { %4252 = vmatmul.mubr.msk.f32.vlgmr.msra.gmra.mrb[24].mxu0 %vm388_vm1, %v3525_v42 }
0x13ee   : > { %v3651_v1 = vpop.f32.mrb[24].mxu0 }
0x13ef   : > { %v3652_v49 = vadd.f32 %v3651_v1, %v3580_v48  ;;  %v4253_v50 = vpop.f32.mrb[25].mxu0 }
0x13f1   : > { %3655 = vst [vmem:[%s332_s1] sm:$0xff] %v3652_v49 }
0x13f2   : > { %4464 = shalt.err (!%p4461_p3)
}
0x13f3   : > { %s4465_s10 = scalar_lea.hbm %s5138_s13, 128  ;;  %s4469_s22 = scalar_lea.hbm %s5187_s7, 256 }
0x13f4   : > { %p4466_p4 = scmp.ne.s32.totalorder %s5138_s13, %s4465_s10  ;;  %p4470_p9 = scmp.lt.u32.totalorder %s5138_s13, %s5187_s7 }
0x13f5   : > { %p4471_p10 = scmp.lt.u32.totalorder %s4469_s22, %s4465_s10  ;;  %p4473_p12 = scmp.lt.u32.totalorder %s4465_s10, %s5138_s13 }
0x13f6   : > { %p4467_p7 = pnand %p4466_p4, %p4615_p5 }
0x13f7   : > { %p4472_p11 = por %p4471_p10, %p4470_p9 }
0x13f8   : > { %p4468_p8 = pneg %p4467_p7 }
0x13f9   : > { %p4474_p13 = por %p4473_p12, %p4472_p11 }
0x13fb   : > { %p4475_p0 = pnand %p4474_p13, %p4468_p8 }
0x13fd   : > { %4478 = shalt.err (!%p4475_p0)
}
0x13fe   : > { %4308 = dma.vmem_to_hbm [thread:$0]  (%p4615_p5), %s5140_s12, 128, %s5138_s13, %s3810_s23  }
0x13ff PF: > { %p4314_p1 = scmp.ge.s32.totalorder %s4513_s30, 2  ;;  %s3842_s1 = sand.u32 1, %s4501_s27  }
0x1400   : > { %s3843_s20 = scalar_lea.sflag [#allocation3], %s3842_s1 }
0x1401   : > { %p4311_p2 = pnand %p4314_p1, %p4619_p6 }
0x1403   : > { %4496 = dma.done.wait (!%p4311_p2), %s3843_s20, 128  }
0x1404   : > { %4498 = vsyncadd (!%p4311_p2), %s3843_s20, 4294967168  ;;  %p19_p3 = scmp.ge.s32.totalorder %s4602_s11, 4   ;;  %s5216_s27 = smov %s4505_s28 }
0x1405   : > { %s5217_s28 = smov %s4509_s29  ;;  %s5218_s29 = smov %s4613_s14 }
0x1406   : > { %s5219_s30 = smov %s4602_s11  ;;  %21 = sbr.rel (!%p19_p3) target bundleno = 6 (0x6), region = 104 }
0x140d   :  { %3855 = vsyncpa [#allocation3], 1 }
0x140e   :  { %3857 = vsyncpa [#allocation3 + $0x1], 1 }

</bundles_post_ra>
